<compile_context>
chip_gen: v5e
topology: v5e:2x2
jax: 0.10.0
libtpu: 0.0.40
codegen_flags: <defaults>
</compile_context>

<pallas_src>
import functools

import numpy as np
import jax
import jax.numpy as jnp
from jax.experimental import pallas as pl
from jax.experimental.pallas import tpu as pltpu

_EPS = 1e-10


def _kl_div_kernel(scores_ref, labels_ref, out_ref,
                   cexp_ref, cA_ref, cB_ref, cL_ref, cmax_ref, racc_ref,
                   *, tau, n_total):
    t = pl.program_id(0)
    nt = pl.num_programs(0)

    # ---- init persistent accumulators on the first tile --------------------
    @pl.when(t == 0)
    def _():
        cexp_ref[...] = jnp.zeros_like(cexp_ref)
        cA_ref[...] = jnp.zeros_like(cA_ref)
        cB_ref[...] = jnp.zeros_like(cB_ref)
        cL_ref[...] = jnp.zeros_like(cL_ref)
        cmax_ref[...] = jnp.full_like(cmax_ref, -jnp.inf)
        racc_ref[...] = jnp.zeros_like(racc_ref)

    z = scores_ref[...].astype(jnp.float32) * (1.0 / tau)           # (TM, N)
    l = jnp.maximum(labels_ref[...].astype(jnp.float32), _EPS)      # (TM, N)
    logl = jnp.log(l)                                               # 1 log / elem
    ll = l * logl
    lz = l * z

    # ---- i2t (row-normalized) contribution: fully local to this tile -------
    rowmax = jnp.max(z, axis=1, keepdims=True)                      # (TM, 1)
    e = jnp.exp(z - rowmax)                                         # 1 exp / elem
    lse_r = rowmax + jnp.log(jnp.sum(e, axis=1, keepdims=True))     # (TM, 1)
    Lr = jnp.sum(l, axis=1, keepdims=True)                          # (TM, 1)
    A = jnp.sum(ll, axis=1, keepdims=True)                          # (TM, 1)
    B = jnp.sum(lz, axis=1, keepdims=True)                          # (TM, 1)
    row_terms = (A - B) / Lr + (lse_r - jnp.log(Lr))                # (TM, 1)
    racc_ref[...] += jnp.sum(row_terms, axis=0, keepdims=True)      # (1, 1)

    # ---- t2i (column-normalized) running statistics -------------------------
    # colsum(exp(z)) kept in scaled form C[j] = sum_i exp(z[i,j] - R),
    # R = running max of z over processed tiles (exp arguments always <= 0).
    R_old = cmax_ref[...]                                           # (1, 1)
    tile_max = jnp.max(rowmax, axis=0, keepdims=True)               # (1, 1)
    R_new = jnp.maximum(R_old, tile_max)                            # (1, 1)
    w = jnp.exp(rowmax - R_new)                                     # (TM, 1) tiny exp
    col_part = jnp.sum(e * w, axis=0, keepdims=True)                # (1, N)
    cexp_ref[...] = cexp_ref[...] * jnp.exp(R_old - R_new) + col_part
    cmax_ref[...] = R_new
    cA_ref[...] += jnp.sum(ll, axis=0, keepdims=True)               # (1, N)
    cB_ref[...] += jnp.sum(lz, axis=0, keepdims=True)               # (1, N)
    cL_ref[...] += jnp.sum(l, axis=0, keepdims=True)                # (1, N)

    # ---- finalize: column-direction cost + write scalar output --------------
    @pl.when(t == nt - 1)
    def _():
        Lc = cL_ref[...]                                            # (1, N)
        lse_c = cmax_ref[...] + jnp.log(cexp_ref[...])              # (1, N)
        col_terms = (cA_ref[...] - cB_ref[...]) / Lc + (lse_c - jnp.log(Lc))
        col_tot = jnp.sum(col_terms, axis=1, keepdims=True)         # (1, 1)
        out_ref[...] = (racc_ref[...] + col_tot) * (1.0 / n_total)


def _pick_tile_rows(n):
    # Big enough to stay near the HBM roofline, small enough for v7x VMEM.
    for tm in (256, 128, 64, 32, 16, 8):
        if n > tm and n % tm == 0:
            return tm
    return n  # monolithic fallback (block == full array, always legal)


def kl_divergence(scores, soft_labels, tau=0.1):
    """Pallas TPU implementation of KL_Divergence.forward. Returns a scalar."""
    assert scores.shape == soft_labels.shape
    n, m = scores.shape
    assert n == m, "score matrix must be square"

    tm = _pick_tile_rows(n)
    grid = (n // tm,)

    kernel = functools.partial(_kl_div_kernel, tau=float(tau), n_total=float(n))
    out = pl.pallas_call(
        kernel,
        out_shape=jax.ShapeDtypeStruct((1, 1), jnp.float32),
        grid_spec=pltpu.PrefetchScalarGridSpec(
            num_scalar_prefetch=0,
            grid=grid,
            in_specs=[
                pl.BlockSpec((tm, n), lambda i: (i, 0)),   # scores row tile
                pl.BlockSpec((tm, n), lambda i: (i, 0)),   # labels row tile
            ],
            out_specs=pl.BlockSpec((1, 1), lambda i: (0, 0)),
            scratch_shapes=[
                pltpu.VMEM((1, n), jnp.float32),  # scaled colsum of exp(z)
                pltpu.VMEM((1, n), jnp.float32),  # colsum l*log l
                pltpu.VMEM((1, n), jnp.float32),  # colsum l*z
                pltpu.VMEM((1, n), jnp.float32),  # colsum l
                pltpu.VMEM((1, 1), jnp.float32),  # running global max of z
                pltpu.VMEM((1, 1), jnp.float32),  # i2t (row) accumulator
            ],
        ),
        compiler_params=pltpu.CompilerParams(
            dimension_semantics=("arbitrary",),   # grid axis carries accumulators
            vmem_limit_bytes=32 * 1024 * 1024,
        ),
    )(scores, soft_labels)
    return out[0, 0]


def _reference_np(scores, soft_labels, tau=0.1):
    """float64 numpy reference mirroring the PyTorch forward exactly."""
    eps = 1e-10
    s = np.exp(scores.astype(np.float64) / tau)
    i2t = s / (s.sum(1, keepdims=True) + eps)
    t2i = s.T / (s.T.sum(1, keepdims=True) + eps)
    l = np.clip(soft_labels.astype(np.float64), eps, None)
    l_i2t = l / l.sum(1, keepdims=True)
    l_t2i = l.T / l.T.sum(1, keepdims=True)
    n = s.shape[0]
    c_i2t = np.sum(l_i2t * (np.log(l_i2t) - np.log(i2t))) / n
    c_t2i = np.sum(l_t2i * (np.log(l_t2i) - np.log(t2i))) / n
    return float(c_i2t + c_t2i)


if __name__ == "__main__":
    key = jax.random.PRNGKey(0)
    k1, k2 = jax.random.split(key)

    # Square image-text similarity matrix (cosine-similarity-like scores).
    N = 256
    scores = jax.random.uniform(k1, (N, N), dtype=jnp.float32,
                                minval=-1.0, maxval=1.0)
    soft_labels = jax.random.uniform(k2, (N, N), dtype=jnp.float32,
                                     minval=0.0, maxval=1.0)

    out = kl_divergence(scores, soft_labels, tau=0.1)
    out = jax.block_until_ready(out)
    out_f = float(out)

    ref = _reference_np(np.asarray(scores), np.asarray(soft_labels), tau=0.1)
    assert np.isfinite(out_f), out_f
    assert abs(out_f - ref) <= 1e-3 + 1e-3 * abs(ref), (out_f, ref)

    print("KERNEL_OK")
</pallas_src>

<mosaic_0001>
module attributes {stable_mosaic.version = 11 : i64} {
  func.func @_kl_div_kernel(%arg0: i32, %arg1: memref<128x256xf32, #tpu.memory_space<vmem>>, %arg2: memref<128x256xf32, #tpu.memory_space<vmem>>, %arg3: memref<1x1xf32, #tpu.memory_space<vmem>>, %arg4: memref<1x256xf32, #tpu.memory_space<vmem>>, %arg5: memref<1x256xf32, #tpu.memory_space<vmem>>, %arg6: memref<1x256xf32, #tpu.memory_space<vmem>>, %arg7: memref<1x256xf32, #tpu.memory_space<vmem>>, %arg8: memref<1x1xf32, #tpu.memory_space<vmem>>, %arg9: memref<1x1xf32, #tpu.memory_space<vmem>>) attributes {dimension_semantics = [#tpu.dimension_semantics<arbitrary>], iteration_bounds = array<i64: 2>, scalar_prefetch = 0 : i64, scratch_operands = 6 : i64, tpu.core_type = #tpu.core_type<tc>, window_params = [{transform_indices = @transform_0, window_bounds = array<i64: 128, 256>}, {transform_indices = @transform_1, window_bounds = array<i64: 128, 256>}, {pipeline_mode = #tpu.pipeline_mode<synchronous>, transform_indices = @transform_2, window_bounds = array<i64: 1, 1>}]} {
    %c0_i32 = arith.constant 0 : i32
    %0 = arith.cmpi eq, %arg0, %c0_i32 : i32
    %1 = arith.extui %0 : i1 to i32
    %c0_i32_0 = arith.constant 0 : i32
    %2 = arith.cmpi ne, %1, %c0_i32_0 : i32
    scf.if %2 {
      %cst_41 = arith.constant 0.000000e+00 : f32
      %74 = vector.broadcast %cst_41 : f32 to vector<1x256xf32>
      %c0_42 = arith.constant 0 : index
      %c0_43 = arith.constant 0 : index
      %75 = vector.load %arg4[%c0_42, %c0_43] : memref<1x256xf32, #tpu.memory_space<vmem>>, vector<1x256xf32>
      tpu.vector_store %arg4[%c0_42, %c0_43], %74 {strides = array<i32>} : memref<1x256xf32, #tpu.memory_space<vmem>>, vector<1x256xf32>,
      %cst_44 = arith.constant 0.000000e+00 : f32
      %76 = vector.broadcast %cst_44 : f32 to vector<1x256xf32>
      %c0_45 = arith.constant 0 : index
      %c0_46 = arith.constant 0 : index
      %77 = vector.load %arg5[%c0_45, %c0_46] : memref<1x256xf32, #tpu.memory_space<vmem>>, vector<1x256xf32>
      tpu.vector_store %arg5[%c0_45, %c0_46], %76 {strides = array<i32>} : memref<1x256xf32, #tpu.memory_space<vmem>>, vector<1x256xf32>,
      %cst_47 = arith.constant 0.000000e+00 : f32
      %78 = vector.broadcast %cst_47 : f32 to vector<1x256xf32>
      %c0_48 = arith.constant 0 : index
      %c0_49 = arith.constant 0 : index
      %79 = vector.load %arg6[%c0_48, %c0_49] : memref<1x256xf32, #tpu.memory_space<vmem>>, vector<1x256xf32>
      tpu.vector_store %arg6[%c0_48, %c0_49], %78 {strides = array<i32>} : memref<1x256xf32, #tpu.memory_space<vmem>>, vector<1x256xf32>,
      %cst_50 = arith.constant 0.000000e+00 : f32
      %80 = vector.broadcast %cst_50 : f32 to vector<1x256xf32>
      %c0_51 = arith.constant 0 : index
      %c0_52 = arith.constant 0 : index
      %81 = vector.load %arg7[%c0_51, %c0_52] : memref<1x256xf32, #tpu.memory_space<vmem>>, vector<1x256xf32>
      tpu.vector_store %arg7[%c0_51, %c0_52], %80 {strides = array<i32>} : memref<1x256xf32, #tpu.memory_space<vmem>>, vector<1x256xf32>,
      %cst_53 = arith.constant 0xFF800000 : f32
      %82 = vector.broadcast %cst_53 : f32 to vector<1x1xf32>
      %c0_54 = arith.constant 0 : index
      %c0_55 = arith.constant 0 : index
      %83 = vector.load %arg8[%c0_54, %c0_55] : memref<1x1xf32, #tpu.memory_space<vmem>>, vector<1x1xf32>
      tpu.vector_store %arg8[%c0_54, %c0_55], %82 {strides = array<i32>} : memref<1x1xf32, #tpu.memory_space<vmem>>, vector<1x1xf32>,
      %cst_56 = arith.constant 0.000000e+00 : f32
      %84 = vector.broadcast %cst_56 : f32 to vector<1x1xf32>
      %c0_57 = arith.constant 0 : index
      %c0_58 = arith.constant 0 : index
      %85 = vector.load %arg9[%c0_57, %c0_58] : memref<1x1xf32, #tpu.memory_space<vmem>>, vector<1x1xf32>
      tpu.vector_store %arg9[%c0_57, %c0_58], %84 {strides = array<i32>} : memref<1x1xf32, #tpu.memory_space<vmem>>, vector<1x1xf32>,
    } else {
    }
    %c0 = arith.constant 0 : index
    %c0_1 = arith.constant 0 : index
    %3 = vector.load %arg1[%c0, %c0_1] : memref<128x256xf32, #tpu.memory_space<vmem>>, vector<128x256xf32>
    %cst = arith.constant 1.000000e+01 : f32
    %4 = vector.broadcast %cst : f32 to vector<128x256xf32>
    %5 = arith.mulf %3, %4 : vector<128x256xf32>
    %c0_2 = arith.constant 0 : index
    %c0_3 = arith.constant 0 : index
    %6 = vector.load %arg2[%c0_2, %c0_3] : memref<128x256xf32, #tpu.memory_space<vmem>>, vector<128x256xf32>
    %cst_4 = arith.constant 1.000000e-10 : f32
    %7 = vector.broadcast %cst_4 : f32 to vector<128x256xf32>
    %8 = arith.maximumf %6, %7 : vector<128x256xf32>
    %9 = math.log %8 : vector<128x256xf32>
    %10 = arith.mulf %8, %9 : vector<128x256xf32>
    %11 = arith.mulf %8, %5 : vector<128x256xf32>
    %cst_5 = arith.constant dense<0xFF800000> : vector<128xf32>
    %12 = vector.multi_reduction <maximumf>, %5, %cst_5 [1] : vector<128x256xf32> to vector<128xf32>
    %13 = vector.shape_cast %12 : vector<128xf32> to vector<128x1xf32>
    %14 = vector.broadcast %13 : vector<128x1xf32> to vector<128x256xf32>
    %15 = arith.subf %5, %14 : vector<128x256xf32>
    %16 = math.exp %15 : vector<128x256xf32>
    %cst_6 = arith.constant dense<0.000000e+00> : vector<128xf32>
    %17 = vector.multi_reduction <add>, %16, %cst_6 [1] : vector<128x256xf32> to vector<128xf32>
    %18 = vector.shape_cast %17 : vector<128xf32> to vector<128x1xf32>
    %19 = math.log %18 : vector<128x1xf32>
    %20 = arith.addf %13, %19 : vector<128x1xf32>
    %cst_7 = arith.constant dense<0.000000e+00> : vector<128xf32>
    %21 = vector.multi_reduction <add>, %8, %cst_7 [1] : vector<128x256xf32> to vector<128xf32>
    %22 = vector.shape_cast %21 : vector<128xf32> to vector<128x1xf32>
    %cst_8 = arith.constant dense<0.000000e+00> : vector<128xf32>
    %23 = vector.multi_reduction <add>, %10, %cst_8 [1] : vector<128x256xf32> to vector<128xf32>
    %24 = vector.shape_cast %23 : vector<128xf32> to vector<128x1xf32>
    %cst_9 = arith.constant dense<0.000000e+00> : vector<128xf32>
    %25 = vector.multi_reduction <add>, %11, %cst_9 [1] : vector<128x256xf32> to vector<128xf32>
    %26 = vector.shape_cast %25 : vector<128xf32> to vector<128x1xf32>
    %27 = arith.subf %24, %26 : vector<128x1xf32>
    %28 = arith.divf %27, %22 : vector<128x1xf32>
    %29 = math.log %22 : vector<128x1xf32>
    %30 = arith.subf %20, %29 : vector<128x1xf32>
    %31 = arith.addf %28, %30 : vector<128x1xf32>
    %c0_10 = arith.constant 0 : index
    %c0_11 = arith.constant 0 : index
    %32 = vector.load %arg9[%c0_10, %c0_11] : memref<1x1xf32, #tpu.memory_space<vmem>>, vector<1x1xf32>
    %cst_12 = arith.constant dense<0.000000e+00> : vector<1xf32>
    %33 = vector.multi_reduction <add>, %31, %cst_12 [0] : vector<128x1xf32> to vector<1xf32>
    %34 = vector.shape_cast %33 : vector<1xf32> to vector<1x1xf32>
    %35 = arith.addf %32, %34 : vector<1x1xf32>
    %c0_13 = arith.constant 0 : index
    %c0_14 = arith.constant 0 : index
    %36 = vector.load %arg9[%c0_13, %c0_14] : memref<1x1xf32, #tpu.memory_space<vmem>>, vector<1x1xf32>
    tpu.vector_store %arg9[%c0_13, %c0_14], %35 {strides = array<i32>} : memref<1x1xf32, #tpu.memory_space<vmem>>, vector<1x1xf32>,
    %c0_15 = arith.constant 0 : index
    %c0_16 = arith.constant 0 : index
    %37 = vector.load %arg8[%c0_15, %c0_16] : memref<1x1xf32, #tpu.memory_space<vmem>>, vector<1x1xf32>
    %cst_17 = arith.constant dense<0xFF800000> : vector<1xf32>
    %38 = vector.multi_reduction <maximumf>, %13, %cst_17 [0] : vector<128x1xf32> to vector<1xf32>
    %39 = vector.shape_cast %38 : vector<1xf32> to vector<1x1xf32>
    %40 = arith.maximumf %37, %39 : vector<1x1xf32>
    %41 = vector.broadcast %40 : vector<1x1xf32> to vector<128x1xf32>
    %42 = arith.subf %13, %41 : vector<128x1xf32>
    %43 = math.exp %42 : vector<128x1xf32>
    %44 = vector.broadcast %43 : vector<128x1xf32> to vector<128x256xf32>
    %45 = arith.mulf %16, %44 : vector<128x256xf32>
    %cst_18 = arith.constant dense<0.000000e+00> : vector<256xf32>
    %46 = vector.multi_reduction <add>, %45, %cst_18 [0] : vector<128x256xf32> to vector<256xf32>
    %47 = vector.shape_cast %46 : vector<256xf32> to vector<1x256xf32>
    %c0_19 = arith.constant 0 : index
    %c0_20 = arith.constant 0 : index
    %48 = vector.load %arg4[%c0_19, %c0_20] : memref<1x256xf32, #tpu.memory_space<vmem>>, vector<1x256xf32>
    %49 = arith.subf %37, %40 : vector<1x1xf32>
    %50 = math.exp %49 : vector<1x1xf32>
    %51 = vector.broadcast %50 : vector<1x1xf32> to vector<1x256xf32>
    %52 = arith.mulf %48, %51 : vector<1x256xf32>
    %53 = arith.addf %52, %47 : vector<1x256xf32>
    %c0_21 = arith.constant 0 : index
    %c0_22 = arith.constant 0 : index
    %54 = vector.load %arg4[%c0_21, %c0_22] : memref<1x256xf32, #tpu.memory_space<vmem>>, vector<1x256xf32>
    tpu.vector_store %arg4[%c0_21, %c0_22], %53 {strides = array<i32>} : memref<1x256xf32, #tpu.memory_space<vmem>>, vector<1x256xf32>,
    %c0_23 = arith.constant 0 : index
    %c0_24 = arith.constant 0 : index
    %55 = vector.load %arg8[%c0_23, %c0_24] : memref<1x1xf32, #tpu.memory_space<vmem>>, vector<1x1xf32>
    tpu.vector_store %arg8[%c0_23, %c0_24], %40 {strides = array<i32>} : memref<1x1xf32, #tpu.memory_space<vmem>>, vector<1x1xf32>,
    %c0_25 = arith.constant 0 : index
    %c0_26 = arith.constant 0 : index
    %56 = vector.load %arg5[%c0_25, %c0_26] : memref<1x256xf32, #tpu.memory_space<vmem>>, vector<1x256xf32>
    %cst_27 = arith.constant dense<0.000000e+00> : vector<256xf32>
    %57 = vector.multi_reduction <add>, %10, %cst_27 [0] : vector<128x256xf32> to vector<256xf32>
    %58 = vector.shape_cast %57 : vector<256xf32> to vector<1x256xf32>
    %59 = arith.addf %56, %58 : vector<1x256xf32>
    %c0_28 = arith.constant 0 : index
    %c0_29 = arith.constant 0 : index
    %60 = vector.load %arg5[%c0_28, %c0_29] : memref<1x256xf32, #tpu.memory_space<vmem>>, vector<1x256xf32>
    tpu.vector_store %arg5[%c0_28, %c0_29], %59 {strides = array<i32>} : memref<1x256xf32, #tpu.memory_space<vmem>>, vector<1x256xf32>,
    %c0_30 = arith.constant 0 : index
    %c0_31 = arith.constant 0 : index
    %61 = vector.load %arg6[%c0_30, %c0_31] : memref<1x256xf32, #tpu.memory_space<vmem>>, vector<1x256xf32>
    %cst_32 = arith.constant dense<0.000000e+00> : vector<256xf32>
    %62 = vector.multi_reduction <add>, %11, %cst_32 [0] : vector<128x256xf32> to vector<256xf32>
    %63 = vector.shape_cast %62 : vector<256xf32> to vector<1x256xf32>
    %64 = arith.addf %61, %63 : vector<1x256xf32>
    %c0_33 = arith.constant 0 : index
    %c0_34 = arith.constant 0 : index
    %65 = vector.load %arg6[%c0_33, %c0_34] : memref<1x256xf32, #tpu.memory_space<vmem>>, vector<1x256xf32>
    tpu.vector_store %arg6[%c0_33, %c0_34], %64 {strides = array<i32>} : memref<1x256xf32, #tpu.memory_space<vmem>>, vector<1x256xf32>,
    %c0_35 = arith.constant 0 : index
    %c0_36 = arith.constant 0 : index
    %66 = vector.load %arg7[%c0_35, %c0_36] : memref<1x256xf32, #tpu.memory_space<vmem>>, vector<1x256xf32>
    %cst_37 = arith.constant dense<0.000000e+00> : vector<256xf32>
    %67 = vector.multi_reduction <add>, %8, %cst_37 [0] : vector<128x256xf32> to vector<256xf32>
    %68 = vector.shape_cast %67 : vector<256xf32> to vector<1x256xf32>
    %69 = arith.addf %66, %68 : vector<1x256xf32>
    %c0_38 = arith.constant 0 : index
    %c0_39 = arith.constant 0 : index
    %70 = vector.load %arg7[%c0_38, %c0_39] : memref<1x256xf32, #tpu.memory_space<vmem>>, vector<1x256xf32>
    tpu.vector_store %arg7[%c0_38, %c0_39], %69 {strides = array<i32>} : memref<1x256xf32, #tpu.memory_space<vmem>>, vector<1x256xf32>,
    %c1_i32 = arith.constant 1 : i32
    %71 = arith.cmpi eq, %arg0, %c1_i32 : i32
    %72 = arith.extui %71 : i1 to i32
    %c0_i32_40 = arith.constant 0 : i32
    %73 = arith.cmpi ne, %72, %c0_i32_40 : i32
    scf.if %73 {
      %c0_41 = arith.constant 0 : index
      %c0_42 = arith.constant 0 : index
      %74 = vector.load %arg7[%c0_41, %c0_42] : memref<1x256xf32, #tpu.memory_space<vmem>>, vector<1x256xf32>
      %c0_43 = arith.constant 0 : index
      %c0_44 = arith.constant 0 : index
      %75 = vector.load %arg8[%c0_43, %c0_44] : memref<1x1xf32, #tpu.memory_space<vmem>>, vector<1x1xf32>
      %c0_45 = arith.constant 0 : index
      %c0_46 = arith.constant 0 : index
      %76 = vector.load %arg4[%c0_45, %c0_46] : memref<1x256xf32, #tpu.memory_space<vmem>>, vector<1x256xf32>
      %77 = math.log %76 : vector<1x256xf32>
      %78 = vector.broadcast %75 : vector<1x1xf32> to vector<1x256xf32>
      %79 = arith.addf %78, %77 : vector<1x256xf32>
      %c0_47 = arith.constant 0 : index
      %c0_48 = arith.constant 0 : index
      %80 = vector.load %arg5[%c0_47, %c0_48] : memref<1x256xf32, #tpu.memory_space<vmem>>, vector<1x256xf32>
      %c0_49 = arith.constant 0 : index
      %c0_50 = arith.constant 0 : index
      %81 = vector.load %arg6[%c0_49, %c0_50] : memref<1x256xf32, #tpu.memory_space<vmem>>, vector<1x256xf32>
      %82 = arith.subf %80, %81 : vector<1x256xf32>
      %83 = arith.divf %82, %74 : vector<1x256xf32>
      %84 = math.log %74 : vector<1x256xf32>
      %85 = arith.subf %79, %84 : vector<1x256xf32>
      %86 = arith.addf %83, %85 : vector<1x256xf32>
      %cst_51 = arith.constant dense<0.000000e+00> : vector<1xf32>
      %87 = vector.multi_reduction <add>, %86, %cst_51 [1] : vector<1x256xf32> to vector<1xf32>
      %88 = vector.shape_cast %87 : vector<1xf32> to vector<1x1xf32>
      %c0_52 = arith.constant 0 : index
      %c0_53 = arith.constant 0 : index
      %89 = vector.load %arg9[%c0_52, %c0_53] : memref<1x1xf32, #tpu.memory_space<vmem>>, vector<1x1xf32>
      %90 = arith.addf %89, %88 : vector<1x1xf32>
      %cst_54 = arith.constant 3.906250e-03 : f32
      %91 = vector.broadcast %cst_54 : f32 to vector<1x1xf32>
      %92 = arith.mulf %90, %91 : vector<1x1xf32>
      %c0_55 = arith.constant 0 : index
      %c0_56 = arith.constant 0 : index
      %93 = vector.load %arg3[%c0_55, %c0_56] : memref<1x1xf32, #tpu.memory_space<vmem>>, vector<1x1xf32>
      tpu.vector_store %arg3[%c0_55, %c0_56], %92 {strides = array<i32>} : memref<1x1xf32, #tpu.memory_space<vmem>>, vector<1x1xf32>,
    } else {
    }
    return
  }
  func.func @transform_0(%arg0: i32) -> (i32, i32) {
    %c0_i32 = arith.constant 0 : i32
    %c0_i32_0 = arith.constant 0 : i32
    return %arg0, %c0_i32 : i32, i32
  }
  func.func @transform_1(%arg0: i32) -> (i32, i32) {
    %c0_i32 = arith.constant 0 : i32
    %c0_i32_0 = arith.constant 0 : i32
    return %arg0, %c0_i32 : i32, i32
  }
  func.func @transform_2(%arg0: i32) -> (i32, i32) {
    %c0_i32 = arith.constant 0 : i32
    %c0_i32_0 = arith.constant 0 : i32
    %c0_i32_1 = arith.constant 0 : i32
    return %c0_i32, %c0_i32_0 : i32, i32
  }
}

</mosaic_0001>

<bundles_post_ra>
// kernel: tpu_custom_call.1
= control target key start
LH: loop header
LB: loop body
LE: loop exit
PB: predicated region body
PF: predicated region fallthrough
CT: control target
= control target key end

     0   :  { %7 = vsyncpa [#allocation9], 0  ;;  %s3964_s0 = inlined_call_operand.hbm [shape: f32[256,256], index: 0, kind: input, shape index: {}]   ;;  %s3965_s1 = inlined_call_operand.hbm [shape: f32[256,256], index: 1, kind: input, shape index: {}]   ;;  %s3966_s2 = inlined_call_operand.hbm [shape: f32[1,1], index: 2, kind: output, shape index: {}]  }
   0x1   :  { %9 = vsyncpa [#allocation9 + $0x1], 0 }
   0x2   :  { %10 = vsyncpa [#allocation12], 0 }
   0x3   :  { %12 = vsyncpa [#allocation12 + $0x1], 0 }
   0x4   :  { %13 = vsyncpa [#allocation10], 0  ;;  %s2237_s9 = smov 0   ;;  %s2239_s10 = smov 0  }
   0x5   :  { %s2241_s11 = smov 0   ;;  %s2243_s12 = smov 0  }
   0x6 LB: > { %s2256_s13 = sadd.s32 4294967295, %s2213_s12   ;;  %s2259_s14 = sadd.s32 1, %s2213_s12   ;;  %s2213_s12 = sphi %s2243_s12, %s4654_s12   ;;  %s2209_s11 = sphi %s2241_s11, %s4653_s11   ;;  %s2205_s10 = sphi %s2239_s10, %s4652_s10   ;;  %s2201_s9 = sphi %s2237_s9, %s4651_s9  }
   0x7   : > { %s23_s15 = ssub.s32 %s2213_s12, %s2259_s14  ;;  %s26_s16 = sadd.s32 1, %s2209_s11 }
   0x8   : > { %p24_p0 = scmp.eq.s32.totalorder %s23_s15, 0  ;;  %p33_p1 = scmp.ne.s32.totalorder %s2209_s11, %s2205_s10 }
   0x9   : > { %p34_p2 = scmp.eq.s32.totalorder %s2213_s12, 0  ;;  %p39_p3 = scmp.ne.s32.totalorder %s2205_s10, %s2201_s9 }
   0xa   : > { %s2269_s17 = scalar_select %p24_p0, %s2209_s11, %s26_s16  }
   0xb   : > { %p2271_p4 = por %p34_p2, %p33_p1  ;;  %p40_p5 = scmp.eq.s32.totalorder %s2256_s13, 0 }
   0xc   : > { %p1773_p6 = scmp.lt.s32.totalorder %s2213_s12, 2  ;;  %s2282_s20 = sand.u32 1, %s2209_s11  }
   0xd   : > { %p2277_p7 = por %p40_p5, %p39_p3  ;;  %s1737_s21 = sshll.u32 %s2282_s20, 8 }
   0xe   : > { %s1755_s22 = sshll.u32 %s2213_s12, 8  ;;  %s114_s26 = scalar_lea.vmem [#allocation8], %s1737_s21 }
   0xf   : > { %s120_s25 = scalar_lea.hbm %s3964_s0, %s1755_s22  ;;  %s123_s27 = sshll.u32 %s114_s26, 4  ;;  %s124_s27 = int_to_ptr.vmem [resolvable:$true] %s123_s27 }
  0x10   : > { %s121_s28 = sshll.u32 %s120_s25, 4  ;;  %p2295_p8 = pnand %p1773_p6, %p2271_p4  ;;  %s122_s28 = int_to_ptr.hbm [resolvable:$true] %s121_s28 }
  0x11   : > { %p1745_p9 = scmp.ge.s32.totalorder %s2213_s12, 1  ;;  %s111_s30 = scalar_lea.sflag [#allocation9], %s2282_s20 }
  0x12   : > { %s2083_s3 = sshra.s32 %s122_s28, 4  ;;  %p2087_p11 = pneg %p2295_p8  ;;  %s2084_s3 = int_to_ptr.hbm [resolvable:$true] %s2083_s3 }
  0x13   : > { %s2085_s4 = scalar_lea.hbm %s2084_s3, 256  ;;  %s2090_s7 = scalar_lea.hbm %s3964_s0, 512 }
  0x14   : > { %p2086_p10 = scmp.ne.s32.totalorder %s2084_s3, %s2085_s4  ;;  %p2091_p0 = scmp.lt.s32.totalorder %s2084_s3, %s3964_s0 }
  0x15   : > { %p2092_p1 = scmp.lt.s32.totalorder %s2090_s7, %s2085_s4 }
  0x16   : > { %p2088_p12 = pnand %p2087_p11, %p2086_p10 }
  0x17   : > { %p2093_p2 = por %p2092_p1, %p2091_p0 }
  0x18   : > { %p2089_p13 = pneg %p2088_p12 }
  0x1a   : > { %p2094_p3 = pnand %p2093_p2, %p2089_p13 }
  0x1c   : > { %2097 = shalt.err (!%p2094_p3)
}
  0x1d   : > { %s2215_s15 = smov 256   ;;  %s2216_s16 = smov 16  }
  0x1e   : > { %1769 = dma.hbm_to_vmem [thread:$0]  (!%p2295_p8), %s122_s28, 4096, %s124_s27, %s111_s30, %s2215_s15, %s2215_s15, %s2216_s16  }
  0x1f   : > { %p154_p4 = scmp.lt.s32.totalorder %s2213_s12, 3  ;;  %s143_s24 = scalar_lea.hbm %s3965_s1, %s1755_s22 }
  0x20   : > { %s144_s26 = sshll.u32 %s143_s24, 4  ;;  %s137_s3 = scalar_lea.vmem [#allocation11], %s1737_s21  ;;  %s145_s26 = int_to_ptr.hbm [resolvable:$true] %s144_s26 }
  0x21   : > { %p2322_p5 = pnand %p1745_p9, %p154_p4  ;;  %s146_s4 = sshll.u32 %s137_s3, 4  ;;  %s147_s4 = int_to_ptr.vmem [resolvable:$true] %s146_s4 }
  0x22   : > { %s134_s5 = scalar_lea.sflag [#allocation12], %s2282_s20  ;;  %s2113_s6 = sshra.s32 %s145_s26, 4  ;;  %s2114_s6 = int_to_ptr.hbm [resolvable:$true] %s2113_s6 }
  0x23   : > { %s2115_s27 = scalar_lea.hbm %s2114_s6, 256  ;;  %s2120_s28 = scalar_lea.hbm %s3965_s1, 512 }
  0x24   : > { %p2116_p6 = scmp.ne.s32.totalorder %s2114_s6, %s2115_s27  ;;  %p2121_p9 = scmp.lt.s32.totalorder %s2114_s6, %s3965_s1 }
  0x25   : > { %p2122_p13 = scmp.lt.s32.totalorder %s2120_s28, %s2115_s27 }
  0x26   : > { %p2118_p10 = pnand %p2116_p6, %p2087_p11 }
  0x27   : > { %p2123_p0 = por %p2122_p13, %p2121_p9 }
  0x28   : > { %p2119_p12 = pneg %p2118_p10 }
  0x2a   : > { %p2124_p1 = pnand %p2123_p0, %p2119_p12 }
  0x2c   : > { %2127 = shalt.err (!%p2124_p1)
}
  0x2d   : > { %1772 = dma.hbm_to_vmem [thread:$0]  (!%p2295_p8), %s145_s26, 4096, %s147_s4, %s134_s5, %s2215_s15, %s2215_s15, %s2216_s16  }
  0x2e   : > { %158 = sbr.rel (%p2322_p5) target bundleno = 785 (0x311), region = 28 }
  0x33   : > { %s160_s20 = sand.u32 1, %s2205_s10  }
  0x34   : > { %s1746_s21 = sshll.u32 %s160_s20, 8  ;;  %s161_s8 = scalar_lea.sflag [#allocation9], %s160_s20 }
  0x35   : > { %s2343_s9 = scalar_lea.vmem [#allocation8], %s1746_s21 }
  0x36   : > { %2188 = dma.done.wait (%p2277_p7), %s161_s8, 4096  }
  0x37   : > { %2190 = vsyncadd (%p2277_p7), %s161_s8, 4294963200  ;;  %s171_s18 = scalar_lea.sflag [#allocation12], %s160_s20  ;;  %s2349_s23 = scalar_lea.vmem [#allocation11], %s1746_s21 }
  0x38   : > { %2192 = dma.done.wait (%p2277_p7), %s171_s18, 4096  }
  0x39   : > { %2194 = vsyncadd (%p2277_p7), %s171_s18, 4294963200  ;;  %p1748_p8 = scmp.ne.s32.totalorder %s2256_s13, 0 }
  0x3b   : > { %201 = sbr.rel (%p1748_p8) target bundleno = 71 (0x47), region = 40 }
  0x40   : > { %v202_v0 = vlaneseq  ;;  %vm210_vm0 = vcmask 0   ;;  %v2217_v1 = vmov -inf   ;;  %v2218_v2 = vmov 0.0  }
  0x41   : > { %211 = vst.msk [vmem:[#allocation6] sm:$0x1] %vm210_vm0, %v2217_v1 }
  0x42   : > { %vm204_vm1 = vcmp.lt.s32.totalorder %v202_v0, 256  ;;  %212 = vst.msk [vmem:[#allocation7] sm:$0x1] %vm210_vm0, %v2218_v2 }
  0x43   : > { %206 = vst.msk [vmem:[#allocation2] sm:$0x3] %vm204_vm1, %v2218_v2 }
  0x44   : > { %207 = vst.msk [vmem:[#allocation3] sm:$0x3] %vm204_vm1, %v2218_v2 }
  0x45   : > { %208 = vst.msk [vmem:[#allocation4] sm:$0x3] %vm204_vm1, %v2218_v2 }
  0x46   : > { %209 = vst.msk [vmem:[#allocation5] sm:$0x3] %vm204_vm1, %v2218_v2 }
  0x47 PF: > { %v221_v3 = vld [vmem:[%s2343_s9 + $0x40] sm:$0xff]  ;;  %v222_v4 = vld [vmem:[%s2343_s9 + $0x48] sm:$0xff]  ;;  %v223_v15 = vld [vmem:[%s2343_s9 + $0x50] sm:$0xff]  ;;  %vm1196_vm2 = vcmask 0   ;;  %p1749_p7 = scmp.ne.s32.totalorder %s2256_s13, 1 }
  0x48   : > { %v217_v5 = vld [vmem:[%s2343_s9 + $0x20] sm:$0xff]  ;;  %v2359_v6 = vmul.f32 10.0, %v221_v3  ;;  %v2361_v7 = vmul.f32 10.0, %v222_v4  ;;  %v218_v8 = vld [vmem:[%s2343_s9 + $0x28] sm:$0xff]  ;;  %v224_v16 = vld [vmem:[%s2343_s9 + $0x58] sm:$0xff]  ;;  %v2386_v24 = vmul.f32 10.0, %v223_v15 }
  0x49   : > { %v2364_v9 = vmul.f32 10.0, %v217_v5  ;;  %v213_v10 = vld [vmem:[%s2343_s9] sm:$0xff]  ;;  %v214_v11 = vld [vmem:[%s2343_s9 + $0x8] sm:$0xff]  ;;  %v2368_v12 = vmul.f32 10.0, %v218_v8  ;;  %v219_v17 = vld [vmem:[%s2343_s9 + $0x30] sm:$0xff]  ;;  %v2388_v25 = vmul.f32 10.0, %v224_v16 }
  0x4a   : > { %4192 = vst [vmem:[#allocation17_spill] sm:$0xff] %v2359_v6  ;;  %v2370_v13 = vmul.f32 10.0, %v213_v10  ;;  %v2372_v14 = vmul.f32 10.0, %v214_v11  ;;  %v481_v18 = vmax.f32 %v2359_v6, %v2361_v7  ;;  %v220_v19 = vld [vmem:[%s2343_s9 + $0x38] sm:$0xff]  ;;  %v215_v20 = vld [vmem:[%s2343_s9 + $0x10] sm:$0xff]  ;;  %v2390_v26 = vmul.f32 10.0, %v219_v17 }
  0x4b   : > { %4193 = vst [vmem:[#allocation18_spill] sm:$0xff] %v2368_v12  ;;  %v216_v21 = vld [vmem:[%s2343_s9 + $0x18] sm:$0xff]  ;;  %v475_v22 = vmax.f32 %v2364_v9, %v2368_v12  ;;  %v2392_v27 = vmul.f32 10.0, %v220_v19  ;;  %v2394_v28 = vmul.f32 10.0, %v215_v20  ;;  %v484_v30 = vmax.f32 %v2386_v24, %v2388_v25  ;;  %v229_v33 = vld [vmem:[%s2343_s9 + $0x80] sm:$0xff]  ;;  %v230_v34 = vld [vmem:[%s2343_s9 + $0x88] sm:$0xff] }
  0x4c   : > { %v469_v23 = vmax.f32 %v2370_v13, %v2372_v14  ;;  %482 = vmax.xlane.f32.xlu2 %v481_v18  ;;  %4194 = vst [vmem:[#allocation19_spill] sm:$0xff] %v2386_v24  ;;  %v2396_v29 = vmul.f32 10.0, %v216_v21  ;;  %v227_v35 = vld [vmem:[%s2343_s9 + $0x70] sm:$0xff]  ;;  %v228_v36 = vld [vmem:[%s2343_s9 + $0x78] sm:$0xff]  ;;  %v225_v37 = vld [vmem:[%s2343_s9 + $0x60] sm:$0xff]  ;;  %v2410_v39 = vmul.f32 10.0, %v229_v33 }
  0x4d   : > { %4195 = vst [vmem:[#allocation20_spill] sm:$0xff] %v2388_v25  ;;  %476 = vmax.xlane.f32.xlu1 %v475_v22  ;;  %v478_v31 = vmax.f32 %v2390_v26, %v2392_v27  ;;  %v226_v38 = vld [vmem:[%s2343_s9 + $0x68] sm:$0xff]  ;;  %v2412_v40 = vmul.f32 10.0, %v230_v34  ;;  %v2414_v41 = vmul.f32 10.0, %v227_v35  ;;  %v2416_v42 = vmul.f32 10.0, %v228_v36  ;;  %v235_v48 = vld [vmem:[%s2343_s9 + $0xb0] sm:$0xff] }
  0x4e   : > { %470 = vmax.xlane.f32.xlu0 %v469_v23  ;;  %4196 = vst [vmem:[#allocation21_spill] sm:$0xff] %v2390_v26  ;;  %v472_v32 = vmax.f32 %v2394_v28, %v2396_v29  ;;  %v2418_v43 = vmul.f32 10.0, %v225_v37  ;;  %v2420_v44 = vmul.f32 10.0, %v226_v38  ;;  %v236_v49 = vld [vmem:[%s2343_s9 + $0xb8] sm:$0xff]  ;;  %v233_v50 = vld [vmem:[%s2343_s9 + $0xa0] sm:$0xff]  ;;  %v234_v51 = vld [vmem:[%s2343_s9 + $0xa8] sm:$0xff] }
  0x4f   : > { %4197 = vst [vmem:[#allocation22_spill] sm:$0xff] %v2392_v27  ;;  %v493_v45 = vmax.f32 %v2410_v39, %v2412_v40  ;;  %v490_v46 = vmax.f32 %v2414_v41, %v2416_v42  ;;  %v231_v52 = vld [vmem:[%s2343_s9 + $0x90] sm:$0xff]  ;;  %v232_v53 = vld [vmem:[%s2343_s9 + $0x98] sm:$0xff]  ;;  %v2434_v54 = vmul.f32 10.0, %v235_v48  ;;  %v2436_v55 = vmul.f32 10.0, %v236_v49  ;;  %v241_v63 = vld [vmem:[%s2343_s9 + $0xe0] sm:$0xff] }
  0x50   : > { %4198 = vst [vmem:[#allocation23_spill] sm:$0xff] %v2410_v39  ;;  %v487_v47 = vmax.f32 %v2418_v43, %v2420_v44  ;;  %v2438_v56 = vmul.f32 10.0, %v233_v50  ;;  %v2440_v57 = vmul.f32 10.0, %v234_v51  ;;  %v2442_v58 = vmul.f32 10.0, %v231_v52  ;;  %v242_v0 = vld [vmem:[%s2343_s9 + $0xe8] sm:$0xff]  ;;  %v239_v1 = vld [vmem:[%s2343_s9 + $0xd0] sm:$0xff] }
  0x51   : > { %4199 = vst [vmem:[#allocation24_spill] sm:$0xff] %v2412_v40  ;;  %v2444_v59 = vmul.f32 10.0, %v232_v53  ;;  %v502_v60 = vmax.f32 %v2434_v54, %v2436_v55  ;;  %v240_v2 = vld [vmem:[%s2343_s9 + $0xd8] sm:$0xff]  ;;  %v237_v3 = vld [vmem:[%s2343_s9 + $0xc0] sm:$0xff]  ;;  %v238_v4 = vld [vmem:[%s2343_s9 + $0xc8] sm:$0xff]  ;;  %v2458_v5 = vmul.f32 10.0, %v241_v63 }
  0x52   : > { %4200 = vst [vmem:[#allocation25_spill] sm:$0xff] %v2414_v41  ;;  %v499_v61 = vmax.f32 %v2438_v56, %v2440_v57  ;;  %v2460_v8 = vmul.f32 10.0, %v242_v0  ;;  %v2462_v10 = vmul.f32 10.0, %v239_v1  ;;  %v2464_v11 = vmul.f32 10.0, %v240_v2  ;;  %v243_v20 = vld [vmem:[%s2343_s9 + $0xf0] sm:$0xff]  ;;  %v277_v21 = vld [vmem:[%s2349_s23] sm:$0xff] }
  0x53   : > { %4201 = vst [vmem:[#allocation26_spill] sm:$0xff] %v2416_v42  ;;  %v496_v62 = vmax.f32 %v2442_v58, %v2444_v59  ;;  %v2466_v15 = vmul.f32 10.0, %v237_v3  ;;  %v2468_v16 = vmul.f32 10.0, %v238_v4  ;;  %v278_v22 = vld [vmem:[%s2349_s23 + $0x8] sm:$0xff]  ;;  %v244_v23 = vld [vmem:[%s2343_s9 + $0xf8] sm:$0xff]  ;;  %v2486_v34 = vmul.f32 10.0, %v243_v20 }
  0x54   : > { %485 = vmax.xlane.f32.xlu2 %v484_v30  ;;  %4202 = vst [vmem:[#allocation27_spill] sm:$0xff] %v2418_v43  ;;  %v511_v17 = vmax.f32 %v2458_v5, %v2460_v8  ;;  %v508_v18 = vmax.f32 %v2462_v10, %v2464_v11  ;;  %v281_v30 = vld [vmem:[%s2349_s23 + $0x20] sm:$0xff]  ;;  %v2484_v33 = vmax.f32 %v278_v22, 1e-10  ;;  %v2488_v35 = vmul.f32 10.0, %v244_v23  ;;  %v283_v48 = vld [vmem:[%s2349_s23 + $0x30] sm:$0xff] }
  0x55   : > { %479 = vmax.xlane.f32.xlu1 %v478_v31  ;;  %4203 = vst [vmem:[#allocation28_spill] sm:$0xff] %v2420_v44  ;;  %v505_v19 = vmax.f32 %v2466_v15, %v2468_v16  ;;  %v282_v31 = vld [vmem:[%s2349_s23 + $0x28] sm:$0xff]  ;;  %v2490_v36 = vmax.f32 %v281_v30, 1e-10  ;;  %v284_v49 = vld [vmem:[%s2349_s23 + $0x38] sm:$0xff]  ;;  %v279_v51 = vld [vmem:[%s2349_s23 + $0x10] sm:$0xff] }
  0x56   : > { %473 = vmax.xlane.f32.xlu0 %v472_v32  ;;  %4204 = vst [vmem:[#allocation29_spill] sm:$0xff] %v2434_v54  ;;  %v2482_v32 = vmax.f32 %v277_v21, 1e-10  ;;  %v2492_v37 = vmax.f32 %v282_v31, 1e-10  ;;  %v288_v50 = vld [vmem:[%s2349_s23 + $0x58] sm:$0xff] }
  0x57   : > { %4205 = vst [vmem:[#allocation30_spill] sm:$0xff] %v2436_v55  ;;  %v280_v52 = vld [vmem:[%s2349_s23 + $0x18] sm:$0xff]  ;;  %v2514_v63 = vmax.f32 %v279_v51, 1e-10  ;;  %v293_v4 = vld [vmem:[%s2349_s23 + $0x80] sm:$0xff]  ;;  %v286_v21 = vld [vmem:[%s2349_s23 + $0x48] sm:$0xff] }
  0x58   : > { %4206 = vst [vmem:[#allocation31_spill] sm:$0xff] %v2438_v56  ;;  %v709_v38 = vadd.f32 %v2484_v33, %v2482_v32  ;;  %v2516_v0 = vmax.f32 %v280_v52, 1e-10  ;;  %v285_v20 = vld [vmem:[%s2349_s23 + $0x40] sm:$0xff]  ;;  %v2530_v22 = vmax.f32 %v293_v4, 1e-10 }
  0x59   : > { %4207 = vst [vmem:[#allocation32_spill] sm:$0xff] %v2440_v57  ;;  %v296_v51 = vld [vmem:[%s2349_s23 + $0x98] sm:$0xff]  ;;  %1818 = vlog2.f32 %v2514_v63 }
  0x5a   : > { %4208 = vst [vmem:[#allocation33_spill] sm:$0xff] %v2442_v58  ;;  %v712_v3 = vadd.f32 %v2516_v0, %v2514_v63  ;;  %v300_v52 = vld [vmem:[%s2349_s23 + $0xb8] sm:$0xff]  ;;  %1820 = vlog2.f32 %v2516_v0 }
  0x5b   : > { %4209 = vst [vmem:[#allocation34_spill] sm:$0xff] %v2444_v59  ;;  %1822 = vlog2.f32 %v2482_v32 }
  0x5c   : > { %494 = vmax.xlane.f32.xlu2 %v493_v45  ;;  %4210 = vst [vmem:[#allocation35_spill] sm:$0xff] %v2458_v5  ;;  %v514_v45 = vmax.f32 %v2486_v34, %v2488_v35  ;;  %1824 = vlog2.f32 %v2484_v33 }
  0x5d   : > { %491 = vmax.xlane.f32.xlu1 %v490_v46  ;;  %4211 = vst [vmem:[#allocation36_spill] sm:$0xff] %v2460_v8  ;;  %v715_v46 = vadd.f32 %v2492_v37, %v2490_v36  ;;  %1826 = vlog2.f32 %v2490_v36 }
  0x5e   : > { %488 = vmax.xlane.f32.xlu0 %v487_v47  ;;  %4212 = vst [vmem:[#allocation37_spill] sm:$0xff] %v2462_v10  ;;  %v287_v47 = vld [vmem:[%s2349_s23 + $0x50] sm:$0xff]  ;;  %1828 = vlog2.f32 %v2492_v37 }
  0x5f   : > { %4213 = vst [vmem:[#allocation38_spill] sm:$0xff] %v2464_v11  ;;  %v2506_v53 = vmax.f32 %v287_v47, 1e-10 }
  0x60   : > { %4214 = vst [vmem:[#allocation39_spill] sm:$0xff] %v2466_v15 }
  0x61   : > { %4215 = vst [vmem:[#allocation40_spill] sm:$0xff] %v2468_v16 }
  0x62   : > { %4216 = vst [vmem:[#allocation41_spill] sm:$0xff] %v2482_v32 }
  0x63   : > { %4217 = vst [vmem:[#allocation42_spill] sm:$0xff] %v2484_v33 }
  0x64   : > { %503 = vmax.xlane.f32.xlu2 %v502_v60  ;;  %4218 = vst [vmem:[#allocation43_spill] sm:$0xff] %v2486_v34  ;;  %v2508_v60 = vmax.f32 %v283_v48, 1e-10 }
  0x65   : > { %500 = vmax.xlane.f32.xlu1 %v499_v61  ;;  %4219 = vst [vmem:[#allocation44_spill] sm:$0xff] %v2488_v35  ;;  %v2510_v61 = vmax.f32 %v284_v49, 1e-10  ;;  %v299_v49 = vld [vmem:[%s2349_s23 + $0xb0] sm:$0xff] }
  0x66   : > { %497 = vmax.xlane.f32.xlu0 %v496_v62  ;;  %4220 = vst [vmem:[#allocation45_spill] sm:$0xff] %v2490_v36  ;;  %v2512_v62 = vmax.f32 %v288_v50, 1e-10  ;;  %v295_v50 = vld [vmem:[%s2349_s23 + $0x90] sm:$0xff] }
  0x67   : > { %4221 = vst [vmem:[#allocation46_spill] sm:$0xff] %v2492_v37  ;;  %v718_v1 = vadd.f32 %v2510_v61, %v2508_v60  ;;  %v2556_v4 = vmax.f32 %v295_v50, 1e-10  ;;  %v305_v50 = vld [vmem:[%s2349_s23 + $0xe0] sm:$0xff] }
  0x68   : > { %4222 = vst [vmem:[#allocation47_spill] sm:$0xff] %v2506_v53  ;;  %v724_v2 = vadd.f32 %v2512_v62, %v2506_v53 }
  0x69   : > { %4223 = vst [vmem:[#allocation48_spill] sm:$0xff] %v2508_v60 }
  0x6a   : > { %4224 = vst [vmem:[#allocation49_spill] sm:$0xff] %v2510_v61 }
  0x6b   : > { %4225 = vst [vmem:[#allocation50_spill] sm:$0xff] %v2512_v62 }
  0x6c   : > { %512 = vmax.xlane.f32.xlu2 %v511_v17  ;;  %4226 = vst [vmem:[#allocation51_spill] sm:$0xff] %v2514_v63  ;;  %v289_v17 = vld [vmem:[%s2349_s23 + $0x60] sm:$0xff] }
  0x6d   : > { %509 = vmax.xlane.f32.xlu1 %v508_v18  ;;  %4227 = vst [vmem:[#allocation52_spill] sm:$0xff] %v2516_v0  ;;  %v290_v18 = vld [vmem:[%s2349_s23 + $0x68] sm:$0xff]  ;;  %v2532_v23 = vmax.f32 %v289_v17, 1e-10  ;;  %v2558_v17 = vmax.f32 %v296_v51, 1e-10 }
  0x6e   : > { %506 = vmax.xlane.f32.xlu0 %v505_v19  ;;  %v294_v19 = vld [vmem:[%s2349_s23 + $0x88] sm:$0xff]  ;;  %4228 = vst [vmem:[#allocation53_spill] sm:$0xff] %v2530_v22  ;;  %v2534_v30 = vmax.f32 %v290_v18, 1e-10  ;;  %v2560_v18 = vmax.f32 %v300_v52, 1e-10 }
  0x6f   : > { %4229 = vst [vmem:[#allocation54_spill] sm:$0xff] %v2532_v23  ;;  %v2536_v31 = vmax.f32 %v294_v19, 1e-10  ;;  %v301_v51 = vld [vmem:[%s2349_s23 + $0xc0] sm:$0xff]  ;;  %v298_v52 = vld [vmem:[%s2349_s23 + $0xa8] sm:$0xff] }
  0x70   : > { %4230 = vst [vmem:[#allocation55_spill] sm:$0xff] %v2534_v30 }
  0x71   : > { %4231 = vst [vmem:[#allocation56_spill] sm:$0xff] %v2536_v31  ;;  %v733_v47 = vadd.f32 %v2536_v31, %v2530_v22  ;;  %v302_v31 = vld [vmem:[%s2349_s23 + $0xc8] sm:$0xff] }
  0x72   : > { %4235 = vst [vmem:[#allocation60_spill] sm:$0xff] %v2556_v4  ;;  %v2582_v22 = vmax.f32 %v302_v31, 1e-10  ;;  %v303_v31 = vld [vmem:[%s2349_s23 + $0xd0] sm:$0xff] }
  0x73   : > { %4236 = vst [vmem:[#allocation61_spill] sm:$0xff] %v2558_v17 }
  0x74   : > { %710 = vadd.xlane.f32.xlu2 %v709_v38  ;;  %v2538_v38 = vmax.f32 %v285_v20, 1e-10  ;;  %4237 = vst [vmem:[#allocation62_spill] sm:$0xff] %v2560_v18 }
  0x75   : > { %716 = vadd.xlane.f32.xlu1 %v715_v46  ;;  %v727_v46 = vadd.f32 %v2534_v30, %v2532_v23  ;;  %4242 = vst [vmem:[#allocation67_spill] sm:$0xff] %v2582_v22 }
  0x76   : > { %515 = vmax.xlane.f32.xlu0 %v514_v45  ;;  %4232 = vst [vmem:[#allocation57_spill] sm:$0xff] %v2538_v38  ;;  %v2540_v45 = vmax.f32 %v286_v21, 1e-10  ;;  %v736_v21 = vadd.f32 %v2558_v17, %v2556_v4 }
  0x78   : > { %4233 = vst [vmem:[#allocation58_spill] sm:$0xff] %v2540_v45  ;;  %v721_v48 = vadd.f32 %v2540_v45, %v2538_v38 }
  0x7c   : > { %719 = vadd.xlane.f32.xlu2 %v718_v1  ;;  %v291_v1 = vld [vmem:[%s2349_s23 + $0x70] sm:$0xff] }
  0x7d   : > { %725 = vadd.xlane.f32.xlu1 %v724_v2  ;;  %v292_v2 = vld [vmem:[%s2349_s23 + $0x78] sm:$0xff]  ;;  %v2562_v19 = vmax.f32 %v291_v1, 1e-10  ;;  %v2578_v1 = vmax.f32 %v305_v50, 1e-10 }
  0x7e   : > { %713 = vadd.xlane.f32.xlu0 %v712_v3  ;;  %v2554_v3 = vmax.f32 %v299_v49, 1e-10  ;;  %v2564_v20 = vmax.f32 %v292_v2, 1e-10  ;;  %v2580_v2 = vmax.f32 %v301_v51, 1e-10 }
  0x7f   : > { %4238 = vst [vmem:[#allocation63_spill] sm:$0xff] %v2562_v19 }
  0x80   : > { %4234 = vst [vmem:[#allocation59_spill] sm:$0xff] %v2554_v3  ;;  %v742_v49 = vadd.f32 %v2560_v18, %v2554_v3 }
  0x81   : > { %4239 = vst [vmem:[#allocation64_spill] sm:$0xff] %v2564_v20 }
  0x82   : > { %4240 = vst [vmem:[#allocation65_spill] sm:$0xff] %v2578_v1 }
  0x83   : > { %4241 = vst [vmem:[#allocation66_spill] sm:$0xff] %v2580_v2 }
  0x84   : > { %728 = vadd.xlane.f32.xlu2 %v727_v46  ;;  %v730_v46 = vadd.f32 %v2564_v20, %v2562_v19  ;;  %v2588_v20 = vmax.f32 %v298_v52, 1e-10  ;;  %v745_v19 = vadd.f32 %v2582_v22, %v2580_v2  ;;  %v307_v52 = vld [vmem:[%s2349_s23 + $0xf0] sm:$0xff] }
  0x85   : > { %734 = vadd.xlane.f32.xlu1 %v733_v47  ;;  %v306_v47 = vld [vmem:[%s2349_s23 + $0xe8] sm:$0xff] }
  0x86   : > { %722 = vadd.xlane.f32.xlu0 %v721_v48  ;;  %v297_v48 = vld [vmem:[%s2349_s23 + $0xa0] sm:$0xff]  ;;  %v2584_v18 = vmax.f32 %v306_v47, 1e-10  ;;  %4245 = vst [vmem:[#allocation70_spill] sm:$0xff] %v2588_v20 }
  0x87   : > { %v2586_v3 = vmax.f32 %v297_v48, 1e-10  ;;  %v1819_v48 = vpop.eup %1818 }
  0x88   : > { %4243 = vst [vmem:[#allocation68_spill] sm:$0xff] %v2584_v18  ;;  %v751_v50 = vadd.f32 %v2584_v18, %v2578_v1 }
  0x89   : > { %4244 = vst [vmem:[#allocation69_spill] sm:$0xff] %v2586_v3 }
  0x8c   : > { %737 = vadd.xlane.f32.xlu2 %v736_v21  ;;  %v739_v21 = vadd.f32 %v2588_v20, %v2586_v3 }
  0x8d   : > { %743 = vadd.xlane.f32.xlu1 %v742_v49  ;;  %v304_v49 = vld [vmem:[%s2349_s23 + $0xd8] sm:$0xff] }
  0x8e   : > { %731 = vadd.xlane.f32.xlu0 %v730_v46  ;;  %v2598_v46 = vmax.f32 %v303_v31, 1e-10  ;;  %v2600_v51 = vmax.f32 %v304_v49, 1e-10  ;;  %v2610_v49 = vmax.f32 %v307_v52, 1e-10 }
  0x90   : > { %4246 = vst [vmem:[#allocation71_spill] sm:$0xff] %v2598_v46  ;;  %v748_v47 = vadd.f32 %v2600_v51, %v2598_v46 }
  0x91   : > { %4247 = vst [vmem:[#allocation72_spill] sm:$0xff] %v2600_v51 }
  0x92   : > { %4248 = vst [vmem:[#allocation73_spill] sm:$0xff] %v2610_v49 }
  0x94   : > { %746 = vadd.xlane.f32.xlu2 %v745_v19  ;;  %v1821_v19 = vpop.eup %1820 }
  0x95   : > { %752 = vadd.xlane.f32.xlu1 %v751_v50  ;;  %v308_v50 = vld [vmem:[%s2349_s23 + $0xf8] sm:$0xff]  ;;  %v1823_v31 = vpop.eup %1822  ;;  %v348_v51 = vmul.f32 0.6931472, %v1821_v19 }
  0x96   : > { %740 = vadd.xlane.f32.xlu0 %v739_v21  ;;  %v346_v21 = vmul.f32 0.6931472, %v1819_v48  ;;  %v2612_v18 = vmax.f32 %v308_v50, 1e-10  ;;  %v1825_v46 = vpop.eup %1824  ;;  %v342_v20 = vmul.f32 0.6931472, %v1823_v31 }
  0x97   : > { %v408_v3 = vmul.f32 %v348_v51, %v2516_v0  ;;  %v344_v48 = vmul.f32 0.6931472, %v1825_v46  ;;  %v1827_v2 = vpop.eup %1826 }
  0x98   : > { %4249 = vst [vmem:[#allocation74_spill] sm:$0xff] %v2612_v18  ;;  %v407_v1 = vmul.f32 %v346_v21, %v2514_v63  ;;  %v405_v52 = vmul.f32 %v342_v20, %v2482_v32  ;;  %v1829_v31 = vpop.eup %1828  ;;  %v350_v63 = vmul.f32 0.6931472, %v1827_v2 }
  0x99   : > { %v406_v19 = vmul.f32 %v344_v48, %v2484_v33  ;;  %v352_v4 = vmul.f32 0.6931472, %v1829_v31 }
  0x9a   : > { %v760_v50 = vadd.f32 %v408_v3, %v407_v1  ;;  %v1451_v22 = vadd.f32 %v407_v1, %v405_v52 }
  0x9b   : > { %v757_v17 = vadd.f32 %v406_v19, %v405_v52  ;;  %v1472_v21 = vadd.f32 %v408_v3, %v406_v19  ;;  %v410_v51 = vmul.f32 %v352_v4, %v2492_v37 }
  0x9d   : > { %761 = vadd.xlane.f32.xlu1 %v760_v50 }
  0x9e   : > { %749 = vadd.xlane.f32.xlu0 %v748_v47  ;;  %v754_v47 = vadd.f32 %v2612_v18, %v2610_v49  ;;  %v409_v18 = vmul.f32 %v350_v63, %v2490_v36 }
  0xa0   : > { %755 = vadd.xlane.f32.xlu2 %v754_v47  ;;  %v2624_v46 = vadd.f32 %v1451_v22, %v409_v18  ;;  %v763_v20 = vadd.f32 %v410_v51, %v409_v18  ;;  %v2626_v47 = vadd.f32 %v1472_v21, %v410_v51 }
  0xa6   : > { %758 = vadd.xlane.f32.xlu0 %v757_v17 }
  0xa8   : > { %764 = vadd.xlane.f32.xlu2 %v763_v20 }
  0xbf   : > { %v2628_v48 = vpop.xlane.xlu2 %482 }
  0xc0   : > { %4250 = vst [vmem:[#allocation75_spill] sm:$0xff] %v2628_v48  ;;  %v2630_v1 = vpop.xlane.xlu1 %476 }
  0xc1   : > { %v2632_v52 = vpop.xlane.xlu0 %470  ;;  %v521_v3 = vsub.f32 %v2364_v9, %v2630_v1  ;;  %v522_v63 = vsub.f32 %v2368_v12, %v2630_v1 }
  0xc2   : > { %4251 = vst [vmem:[#allocation76_spill] sm:$0xff] %v2632_v52  ;;  %v517_v22 = vsub.f32 %v2370_v13, %v2632_v52  ;;  %v518_v4 = vsub.f32 %v2372_v14, %v2632_v52 }
  0xc3   : > { %v557_v17 = vmul.f32 1.442695, %v521_v3  ;;  %v559_v18 = vmul.f32 1.442695, %v522_v63  ;;  %v525_v3 = vsub.f32 %v2359_v6, %v2628_v48 }
  0xc4   : > { %v549_v2 = vmul.f32 1.442695, %v517_v22  ;;  %v551_v50 = vmul.f32 1.442695, %v518_v4 }
  0xc5   : > { %1830 = vpow2.f32 %v557_v17  ;;  %v565_v36 = vmul.f32 1.442695, %v525_v3 }
  0xc6   : > { %1832 = vpow2.f32 %v559_v18 }
  0xc7   : > { %v2642_v19 = vpop.xlane.xlu2 %485  ;;  %1834 = vpow2.f32 %v549_v2 }
  0xc8   : > { %4252 = vst [vmem:[#allocation77_spill] sm:$0xff] %v2642_v19  ;;  %v527_v21 = vsub.f32 %v2386_v24, %v2642_v19  ;;  %v528_v31 = vsub.f32 %v2388_v25, %v2642_v19  ;;  %v2648_v51 = vpop.xlane.xlu1 %479  ;;  %1836 = vpow2.f32 %v551_v50  ;;  %v526_v50 = vsub.f32 %v2361_v7, %v2628_v48 }
  0xc9   : > { %4253 = vst [vmem:[#allocation78_spill] sm:$0xff] %v2648_v51  ;;  %v2650_v20 = vpop.xlane.xlu0 %473  ;;  %v523_v63 = vsub.f32 %v2390_v26, %v2648_v51  ;;  %v524_v22 = vsub.f32 %v2392_v27, %v2648_v51 }
  0xca   : > { %4254 = vst [vmem:[#allocation79_spill] sm:$0xff] %v2650_v20  ;;  %v519_v4 = vsub.f32 %v2394_v28, %v2650_v20  ;;  %v520_v17 = vsub.f32 %v2396_v29, %v2650_v20  ;;  %v569_v18 = vmul.f32 1.442695, %v527_v21  ;;  %v571_v2 = vmul.f32 1.442695, %v528_v31 }
  0xcb   : > { %v2662_v25 = vpop.eup %1830  ;;  %v561_v24 = vmul.f32 1.442695, %v523_v63  ;;  %v563_v6 = vmul.f32 1.442695, %v524_v22 }
  0xcc   : > { %4255 = vst [vmem:[#allocation80_spill] sm:$0xff] %v2662_v25  ;;  %v2666_v37 = vpop.eup %1832  ;;  %1838 = vpow2.f32 %v569_v18  ;;  %v553_v26 = vmul.f32 1.442695, %v519_v4  ;;  %v555_v31 = vmul.f32 1.442695, %v520_v17 }
  0xcd   : > { %4256 = vst [vmem:[#allocation81_spill] sm:$0xff] %v2666_v37  ;;  %v2668_v27 = vpop.eup %1834  ;;  %v619_v12 = vadd.f32 %v2666_v37, %v2662_v25  ;;  %1840 = vpow2.f32 %v571_v2  ;;  %v567_v18 = vmul.f32 1.442695, %v526_v50 }
  0xce   : > { %4257 = vst [vmem:[#allocation82_spill] sm:$0xff] %v2668_v27  ;;  %v2672_v21 = vpop.eup %1836  ;;  %1842 = vpow2.f32 %v561_v24 }
  0xcf   : > { %4258 = vst [vmem:[#allocation83_spill] sm:$0xff] %v2672_v21  ;;  %620 = vadd.xlane.f32.xlu0 %v619_v12  ;;  %v613_v63 = vadd.f32 %v2672_v21, %v2668_v27  ;;  %v2676_v22 = vpop.xlane.xlu2 %494  ;;  %1844 = vpow2.f32 %v563_v6 }
  0xd0   : > { %4259 = vst [vmem:[#allocation84_spill] sm:$0xff] %v2676_v22  ;;  %v533_v4 = vsub.f32 %v2410_v39, %v2676_v22  ;;  %v534_v37 = vsub.f32 %v2412_v40, %v2676_v22  ;;  %v2682_v2 = vpop.xlane.xlu1 %491  ;;  %1846 = vpow2.f32 %v553_v26 }
  0xd1   : > { %4260 = vst [vmem:[#allocation85_spill] sm:$0xff] %v2682_v2  ;;  %v2684_v3 = vpop.xlane.xlu0 %488  ;;  %614 = vadd.xlane.f32.xlu1 %v613_v63  ;;  %v531_v12 = vsub.f32 %v2414_v41, %v2682_v2  ;;  %1848 = vpow2.f32 %v565_v36  ;;  %v532_v26 = vsub.f32 %v2416_v42, %v2682_v2 }
  0xd2   : > { %4261 = vst [vmem:[#allocation86_spill] sm:$0xff] %v2684_v3  ;;  %v529_v24 = vsub.f32 %v2418_v43, %v2684_v3  ;;  %v2690_v6 = vpop.eup %1838  ;;  %v530_v17 = vsub.f32 %v2420_v44, %v2684_v3  ;;  %1850 = vpow2.f32 %v555_v31  ;;  %v581_v50 = vmul.f32 1.442695, %v533_v4 }
  0xd3   : > { %4262 = vst [vmem:[#allocation87_spill] sm:$0xff] %v2690_v6  ;;  %v2694_v25 = vpop.eup %1840  ;;  %v583_v63 = vmul.f32 1.442695, %v534_v37  ;;  %1852 = vpow2.f32 %v567_v18  ;;  %v577_v31 = vmul.f32 1.442695, %v531_v12 }
  0xd4   : > { %4263 = vst [vmem:[#allocation88_spill] sm:$0xff] %v2694_v25  ;;  %v573_v21 = vmul.f32 1.442695, %v529_v24  ;;  %v2698_v27 = vpop.eup %1842  ;;  %v628_v36 = vadd.f32 %v2694_v25, %v2690_v6  ;;  %1854 = vpow2.f32 %v581_v50  ;;  %v575_v40 = vmul.f32 1.442695, %v530_v17 }
  0xd5   : > { %4264 = vst [vmem:[#allocation89_spill] sm:$0xff] %v2698_v27  ;;  %v2702_v39 = vpop.eup %1844  ;;  %1856 = vpow2.f32 %v583_v63  ;;  %v579_v24 = vmul.f32 1.442695, %v532_v26 }
  0xd6   : > { %4265 = vst [vmem:[#allocation90_spill] sm:$0xff] %v2702_v39  ;;  %v2704_v4 = vpop.eup %1846  ;;  %v622_v41 = vadd.f32 %v2702_v39, %v2698_v27  ;;  %1858 = vpow2.f32 %v573_v21 }
  0xd7   : > { %4266 = vst [vmem:[#allocation91_spill] sm:$0xff] %v2704_v4  ;;  %v2708_v37 = vpop.eup %1848  ;;  %629 = vadd.xlane.f32.xlu0 %v628_v36  ;;  %v2710_v18 = vpop.xlane.xlu2 %503  ;;  %1860 = vpow2.f32 %v575_v40 }
  0xd8   : > { %4267 = vst [vmem:[#allocation92_spill] sm:$0xff] %v2708_v37  ;;  %v2712_v25 = vpop.eup %1850  ;;  %v539_v17 = vsub.f32 %v2434_v54, %v2710_v18  ;;  %v540_v12 = vsub.f32 %v2436_v55, %v2710_v18  ;;  %v2718_v50 = vpop.xlane.xlu1 %500  ;;  %1862 = vpow2.f32 %v577_v31 }
  0xd9   : > { %4268 = vst [vmem:[#allocation93_spill] sm:$0xff] %v2710_v18  ;;  %v2720_v63 = vpop.xlane.xlu0 %497  ;;  %v2722_v21 = vpop.eup %1852  ;;  %623 = vadd.xlane.f32.xlu1 %v622_v41  ;;  %v616_v36 = vadd.f32 %v2712_v25, %v2704_v4  ;;  %v537_v26 = vsub.f32 %v2438_v56, %v2718_v50  ;;  %v538_v41 = vsub.f32 %v2440_v57, %v2718_v50  ;;  %1864 = vpow2.f32 %v579_v24 }
  0xda   : > { %4269 = vst [vmem:[#allocation94_spill] sm:$0xff] %v2712_v25  ;;  %v2726_v40 = vpop.eup %1854  ;;  %v535_v6 = vsub.f32 %v2442_v58, %v2720_v63  ;;  %v536_v39 = vsub.f32 %v2444_v59, %v2720_v63  ;;  %v593_v27 = vmul.f32 1.442695, %v539_v17  ;;  %v595_v25 = vmul.f32 1.442695, %v540_v12 }
  0xdb   : > { %4270 = vst [vmem:[#allocation95_spill] sm:$0xff] %v2718_v50  ;;  %v2734_v55 = vpop.eup %1856  ;;  %617 = vadd.xlane.f32.xlu2 %v616_v36  ;;  %v589_v36 = vmul.f32 1.442695, %v537_v26  ;;  %v625_v24 = vadd.f32 %v2722_v21, %v2708_v37 }
  0xdc   : > { %4271 = vst [vmem:[#allocation96_spill] sm:$0xff] %v2720_v63  ;;  %v2738_v31 = vpop.eup %1858  ;;  %v637_v4 = vadd.f32 %v2734_v55, %v2726_v40  ;;  %1866 = vpow2.f32 %v593_v27  ;;  %v585_v54 = vmul.f32 1.442695, %v535_v6  ;;  %v587_v56 = vmul.f32 1.442695, %v536_v39 }
  0xdd   : > { %4272 = vst [vmem:[#allocation97_spill] sm:$0xff] %v2722_v21  ;;  %v2742_v58 = vpop.eup %1860  ;;  %1868 = vpow2.f32 %v595_v25  ;;  %v591_v27 = vmul.f32 1.442695, %v538_v41 }
  0xde   : > { %4273 = vst [vmem:[#allocation98_spill] sm:$0xff] %v2726_v40  ;;  %v631_v17 = vadd.f32 %v2742_v58, %v2738_v31  ;;  %1870 = vpow2.f32 %v585_v54  ;;  %v2746_v59 = vpop.eup %1862 }
  0xdf   : > { %4274 = vst [vmem:[#allocation99_spill] sm:$0xff] %v2734_v55  ;;  %638 = vadd.xlane.f32.xlu0 %v637_v4  ;;  %v2750_v12 = vpop.xlane.xlu2 %512  ;;  %1872 = vpow2.f32 %v587_v56  ;;  %v2758_v54 = vpop.eup %1864 }
  0xe0   : > { %4275 = vst [vmem:[#allocation100_spill] sm:$0xff] %v2738_v31  ;;  %v545_v39 = vsub.f32 %v2458_v5, %v2750_v12  ;;  %v546_v25 = vsub.f32 %v2460_v8, %v2750_v12  ;;  %v2760_v26 = vpop.xlane.xlu1 %509  ;;  %1874 = vpow2.f32 %v589_v36 }
  0xe1   : > { %4276 = vst [vmem:[#allocation101_spill] sm:$0xff] %v2742_v58  ;;  %v2756_v6 = vpop.xlane.xlu0 %506  ;;  %632 = vadd.xlane.f32.xlu1 %v631_v17  ;;  %v543_v56 = vsub.f32 %v2462_v10, %v2760_v26  ;;  %v544_v17 = vsub.f32 %v2464_v11, %v2760_v26  ;;  %1876 = vpow2.f32 %v591_v27  ;;  %v634_v27 = vadd.f32 %v2758_v54, %v2746_v59 }
  0xe2   : > { %4277 = vst [vmem:[#allocation102_spill] sm:$0xff] %v2746_v59  ;;  %v541_v4 = vsub.f32 %v2466_v15, %v2756_v6  ;;  %v2764_v55 = vpop.eup %1866  ;;  %v542_v41 = vsub.f32 %v2468_v16, %v2756_v6  ;;  %v605_v40 = vmul.f32 1.442695, %v545_v39  ;;  %v607_v31 = vmul.f32 1.442695, %v546_v25  ;;  %v4299_v59 = vld [vmem:[#allocation53_spill] sm:$0xff] }
  0xe3   : > { %4278 = vst [vmem:[#allocation103_spill] sm:$0xff] %v2750_v12  ;;  %v2770_v58 = vpop.eup %1868  ;;  %626 = vadd.xlane.f32.xlu2 %v625_v24  ;;  %v601_v24 = vmul.f32 1.442695, %v543_v56  ;;  %v603_v39 = vmul.f32 1.442695, %v544_v17 }
  0xe4   : > { %4279 = vst [vmem:[#allocation104_spill] sm:$0xff] %v2756_v6  ;;  %v597_v21 = vmul.f32 1.442695, %v541_v4  ;;  %v2774_v37 = vpop.eup %1870  ;;  %v646_v8 = vadd.f32 %v2770_v58, %v2764_v55  ;;  %1878 = vpow2.f32 %v605_v40  ;;  %v599_v5 = vmul.f32 1.442695, %v542_v41 }
  0xe5   : > { %4280 = vst [vmem:[#allocation105_spill] sm:$0xff] %v2758_v54  ;;  %v2778_v10 = vpop.eup %1872  ;;  %1880 = vpow2.f32 %v607_v31  ;;  %v4298_v54 = vld [vmem:[#allocation61_spill] sm:$0xff] }
  0xe6   : > { %4281 = vst [vmem:[#allocation106_spill] sm:$0xff] %v2760_v26  ;;  %v640_v36 = vadd.f32 %v2778_v10, %v2774_v37  ;;  %1882 = vpow2.f32 %v597_v21  ;;  %v2784_v25 = vpop.eup %1874 }
  0xe7   : > { %4282 = vst [vmem:[#allocation107_spill] sm:$0xff] %v2764_v55  ;;  %647 = vadd.xlane.f32.xlu0 %v646_v8  ;;  %1884 = vpow2.f32 %v599_v5  ;;  %v2789_v40 = vpop.eup %1876 }
  0xe8   : > { %4283 = vst [vmem:[#allocation108_spill] sm:$0xff] %v2770_v58  ;;  %1886 = vlog2.f32 %v2508_v60 }
  0xe9   : > { %4284 = vst [vmem:[#allocation109_spill] sm:$0xff] %v2774_v37  ;;  %v2786_v4 = vpop.xlane.xlu0 %515  ;;  %641 = vadd.xlane.f32.xlu1 %v640_v36  ;;  %1888 = vlog2.f32 %v2510_v61 }
  0xea   : > { %4285 = vst [vmem:[#allocation110_spill] sm:$0xff] %v2778_v10  ;;  %v547_v31 = vsub.f32 %v2486_v34, %v2786_v4  ;;  %v548_v8 = vsub.f32 %v2488_v35, %v2786_v4  ;;  %v2796_v21 = vpop.eup %1878  ;;  %1890 = vpow2.f32 %v601_v24  ;;  %v4301_v34 = vld [vmem:[#allocation63_spill] sm:$0xff] }
  0xeb   : > { %4286 = vst [vmem:[#allocation111_spill] sm:$0xff] %v2784_v25  ;;  %v2798_v5 = vpop.eup %1880  ;;  %635 = vadd.xlane.f32.xlu2 %v634_v27  ;;  %1892 = vpow2.f32 %v603_v39  ;;  %v643_v27 = vadd.f32 %v2789_v40, %v2784_v25 }
  0xec   : > { %4287 = vst [vmem:[#allocation112_spill] sm:$0xff] %v2786_v4  ;;  %v609_v56 = vmul.f32 1.442695, %v547_v31  ;;  %v611_v41 = vmul.f32 1.442695, %v548_v8  ;;  %v2800_v17 = vpop.eup %1882  ;;  %v655_v36 = vadd.f32 %v2798_v5, %v2796_v21  ;;  %1894 = vlog2.f32 %v2532_v23 }
  0xed   : > { %4288 = vst [vmem:[#allocation113_spill] sm:$0xff] %v2789_v40  ;;  %v2805_v58 = vpop.eup %1884 }
  0xee   : > { %4289 = vst [vmem:[#allocation114_spill] sm:$0xff] %v2796_v21  ;;  %1896 = vpow2.f32 %v609_v56  ;;  %v1887_v55 = vpop.eup %1886  ;;  %v649_v24 = vadd.f32 %v2805_v58, %v2800_v17 }
  0xef   : > { %4290 = vst [vmem:[#allocation115_spill] sm:$0xff] %v2798_v5  ;;  %1898 = vpow2.f32 %v611_v41  ;;  %v1889_v10 = vpop.eup %1888  ;;  %656 = vadd.xlane.f32.xlu0 %v655_v36  ;;  %v354_v39 = vmul.f32 0.6931472, %v1887_v55 }
  0xf0   : > { %4291 = vst [vmem:[#allocation116_spill] sm:$0xff] %v2800_v17  ;;  %1900 = vlog2.f32 %v2534_v30  ;;  %v2812_v31 = vpop.eup %1890  ;;  %v356_v8 = vmul.f32 0.6931472, %v1889_v10 }
  0xf1   : > { %4292 = vst [vmem:[#allocation117_spill] sm:$0xff] %v2805_v58  ;;  %1902 = vlog2.f32 %v2506_v53  ;;  %v2815_v5 = vpop.eup %1892  ;;  %650 = vadd.xlane.f32.xlu1 %v649_v24  ;;  %v411_v56 = vmul.f32 %v354_v39, %v2508_v60 }
  0xf2   : > { %4293 = vst [vmem:[#allocation118_spill] sm:$0xff] %v2812_v31  ;;  %1904 = vlog2.f32 %v2512_v62  ;;  %v1895_v41 = vpop.eup %1894  ;;  %v412_v36 = vmul.f32 %v356_v8, %v2510_v61  ;;  %v4297_v8 = vld [vmem:[#allocation60_spill] sm:$0xff] }
  0xf3   : > { %4294 = vst [vmem:[#allocation119_spill] sm:$0xff] %v2815_v5  ;;  %1906 = vlog2.f32 %v2538_v38  ;;  %644 = vadd.xlane.f32.xlu2 %v643_v27  ;;  %v1453_v21 = vadd.f32 %v2624_v46, %v411_v56  ;;  %v366_v10 = vmul.f32 0.6931472, %v1895_v41  ;;  %v652_v46 = vadd.f32 %v2815_v5, %v2812_v31 }
  0xf4   : > { %v2821_v55 = vpop.eup %1896  ;;  %1908 = vlog2.f32 %v2540_v45  ;;  %v766_v24 = vadd.f32 %v412_v36, %v411_v56  ;;  %v1474_v39 = vadd.f32 %v2626_v47, %v412_v36 }
  0xf5   : > { %4295 = vst [vmem:[#allocation120_spill] sm:$0xff] %v2821_v55  ;;  %v2825_v58 = vpop.eup %1898  ;;  %1910 = vlog2.f32 %v4297_v8  ;;  %v417_v41 = vmul.f32 %v366_v10, %v2532_v23  ;;  %v4302_v10 = vld [vmem:[#allocation64_spill] sm:$0xff] }
  0xf6   : > { %4296 = vst [vmem:[#allocation121_spill] sm:$0xff] %v2825_v58  ;;  %v1901_v17 = vpop.eup %1900  ;;  %v658_v40 = vadd.f32 %v2825_v58, %v2821_v55  ;;  %1912 = vlog2.f32 %v4298_v54  ;;  %v4300_v55 = vld [vmem:[#allocation56_spill] sm:$0xff] }
  0xf7   : > { %v1903_v25 = vpop.eup %1902  ;;  %v368_v37 = vmul.f32 0.6931472, %v1901_v17  ;;  %767 = vadd.xlane.f32.xlu0 %v766_v24  ;;  %1914 = vlog2.f32 %v4299_v59 }
  0xf8   : > { %v1905_v27 = vpop.eup %1904  ;;  %v362_v56 = vmul.f32 0.6931472, %v1903_v25  ;;  %1916 = vlog2.f32 %v4300_v55 }
  0xf9   : > { %v1907_v47 = vpop.eup %1906  ;;  %v418_v36 = vmul.f32 %v368_v37, %v2534_v30  ;;  %v364_v58 = vmul.f32 0.6931472, %v1905_v27  ;;  %659 = vadd.xlane.f32.xlu1 %v658_v40  ;;  %1918 = vlog2.f32 %v4301_v34  ;;  %v4303_v40 = vld [vmem:[#allocation66_spill] sm:$0xff] }
  0xfa   : > { %v1909_v35 = vpop.eup %1908  ;;  %v358_v17 = vmul.f32 0.6931472, %v1907_v47  ;;  %v415_v24 = vmul.f32 %v362_v56, %v2506_v53  ;;  %1920 = vlog2.f32 %v4302_v10 }
  0xfb   : > { %v416_v5 = vmul.f32 %v364_v58, %v2512_v62  ;;  %v360_v31 = vmul.f32 0.6931472, %v1909_v35  ;;  %v1911_v25 = vpop.eup %1910  ;;  %653 = vadd.xlane.f32.xlu2 %v652_v46  ;;  %v775_v11 = vadd.f32 %v418_v36, %v417_v41  ;;  %1922 = vlog2.f32 %v4303_v40 }
  0xfc   : > { %v413_v37 = vmul.f32 %v358_v17, %v2538_v38  ;;  %v1913_v27 = vpop.eup %1912  ;;  %v378_v15 = vmul.f32 0.6931472, %v1911_v25 }
  0xfd   : > { %v414_v16 = vmul.f32 %v360_v31, %v2540_v45  ;;  %v1915_v47 = vpop.eup %1914  ;;  %v380_v42 = vmul.f32 0.6931472, %v1913_v27  ;;  %v772_v30 = vadd.f32 %v416_v5, %v415_v24  ;;  %v4304_v45 = vld [vmem:[#allocation67_spill] sm:$0xff] }
  0xfe   : > { %v1454_v57 = vadd.f32 %v1453_v21, %v413_v37  ;;  %v1917_v56 = vpop.eup %1916  ;;  %v374_v44 = vmul.f32 0.6931472, %v1915_v47  ;;  %v423_v43 = vmul.f32 %v378_v15, %v4297_v8  ;;  %1924 = vlog2.f32 %v4304_v45 }
  0xff   : > { %v769_v58 = vadd.f32 %v414_v16, %v413_v37  ;;  %v1475_v35 = vadd.f32 %v1474_v39, %v414_v16  ;;  %v1919_v23 = vpop.eup %1918  ;;  %776 = vadd.xlane.f32.xlu0 %v775_v11  ;;  %v424_v17 = vmul.f32 %v380_v42, %v4298_v54  ;;  %v376_v62 = vmul.f32 0.6931472, %v1917_v56 }
 0x100   : > { %v1455_v46 = vadd.f32 %v1454_v57, %v415_v24  ;;  %v1921_v31 = vpop.eup %1920  ;;  %v370_v53 = vmul.f32 0.6931472, %v1919_v23  ;;  %v421_v21 = vmul.f32 %v374_v44, %v4299_v59  ;;  %v4305_v23 = vld [vmem:[#allocation59_spill] sm:$0xff] }
 0x101   : > { %v1476_v25 = vadd.f32 %v1475_v35, %v416_v5  ;;  %770 = vadd.xlane.f32.xlu1 %v769_v58  ;;  %v372_v27 = vmul.f32 0.6931472, %v1921_v31  ;;  %v1923_v37 = vpop.eup %1922  ;;  %v422_v16 = vmul.f32 %v376_v62, %v4300_v55  ;;  %v784_v15 = vadd.f32 %v424_v17, %v423_v43  ;;  %v4306_v58 = vld [vmem:[#allocation62_spill] sm:$0xff]  ;;  %v4307_v62 = vld [vmem:[#allocation69_spill] sm:$0xff] }
 0x102   : > { %v419_v11 = vmul.f32 %v370_v53, %v4301_v34  ;;  %v1456_v57 = vadd.f32 %v1455_v46, %v417_v41  ;;  %v390_v24 = vmul.f32 0.6931472, %v1923_v37  ;;  %1926 = vlog2.f32 %v4305_v23  ;;  %v2855_v53 = vpop.xlane.xlu0 %713  ;;  %v4309_v46 = vld [vmem:[#allocation70_spill] sm:$0xff] }
 0x103   : > { %v1477_v39 = vadd.f32 %v1476_v25, %v418_v36  ;;  %773 = vadd.xlane.f32.xlu2 %v772_v30  ;;  %v420_v42 = vmul.f32 %v372_v27, %v4302_v10  ;;  %1928 = vlog2.f32 %v4306_v58  ;;  %v781_v35 = vadd.f32 %v422_v16, %v421_v21  ;;  %4308 = vst [vmem:[#allocation122_spill] sm:$0xff] %v2855_v53  ;;  %v2861_v27 = vpop.xlane.xlu2 %710 }
 0x104   : > { %v1457_v5 = vadd.f32 %v1456_v57, %v419_v11  ;;  %v1925_v44 = vpop.eup %1924  ;;  %1930 = vlog2.f32 %v4307_v62  ;;  %v2858_v36 = vmul.f32 %v390_v24, %v4303_v40  ;;  %4310 = vst [vmem:[#allocation123_spill] sm:$0xff] %v2861_v27  ;;  %v2866_v57 = vpop.xlane.xlu1 %716  ;;  %v2877_v24 = vmul.f32 %v2482_v32, %v2370_v13 }
 0x105   : > { %v778_v47 = vadd.f32 %v420_v42, %v419_v11  ;;  %v1478_v56 = vadd.f32 %v1477_v39, %v420_v42  ;;  %v392_v41 = vmul.f32 0.6931472, %v1925_v44  ;;  %1932 = vlog2.f32 %v4309_v46  ;;  %4311 = vst [vmem:[#allocation124_spill] sm:$0xff] %v2866_v57  ;;  %v4312_v39 = vld [vmem:[#allocation51_spill] sm:$0xff] }
 0x106   : > { %v1458_v31 = vadd.f32 %v1457_v5, %v421_v21  ;;  %1934 = vlog2.f32 %v2610_v49  ;;  %v1201_v27 = vmax.f32 %v2630_v1, %v2684_v3 }
 0x107   : > { %785 = vadd.xlane.f32.xlu0 %v784_v15  ;;  %v1479_v30 = vadd.f32 %v1478_v56, %v422_v16  ;;  %v2864_v37 = vmul.f32 %v392_v41, %v4304_v45  ;;  %v2870_v16 = vmul.f32 %v4312_v39, %v2394_v28  ;;  %v2882_v28 = vmul.f32 %v2516_v0, %v2396_v29  ;;  %v4316_v0 = vld [vmem:[#allocation71_spill] sm:$0xff] }
 0x108   : > { %v1459_v25 = vadd.f32 %v1458_v31, %v423_v43  ;;  %v1927_v11 = vpop.eup %1926  ;;  %v2886_v56 = vmul.f32 %v2484_v33, %v2372_v14  ;;  %v4317_v33 = vld [vmem:[#allocation72_spill] sm:$0xff] }
 0x109   : > { %779 = vadd.xlane.f32.xlu1 %v778_v47  ;;  %v1480_v21 = vadd.f32 %v1479_v30, %v424_v17  ;;  %v1929_v15 = vpop.eup %1928  ;;  %v793_v42 = vadd.f32 %v2864_v37, %v2858_v36  ;;  %v386_v43 = vmul.f32 0.6931472, %v1927_v11  ;;  %v4313_v47 = vld [vmem:[#allocation74_spill] sm:$0xff]  ;;  %v4314_v30 = vld [vmem:[#allocation65_spill] sm:$0xff]  ;;  %v1501_v13 = vadd.f32 %v2870_v16, %v2877_v24 }
 0x10a   : > { %v1931_v17 = vpop.eup %1930  ;;  %v388_v5 = vmul.f32 0.6931472, %v1929_v15  ;;  %1936 = vlog2.f32 %v4313_v47  ;;  %v4315_v15 = vld [vmem:[#allocation68_spill] sm:$0xff]  ;;  %v1522_v29 = vadd.f32 %v2882_v28, %v2886_v56  ;;  %v2900_v39 = vpop.xlane.xlu0 %722 }
 0x10b   : > { %782 = vadd.xlane.f32.xlu2 %v781_v35  ;;  %v1933_v44 = vpop.eup %1932  ;;  %v427_v35 = vmul.f32 %v386_v43, %v4305_v23  ;;  %v382_v31 = vmul.f32 0.6931472, %v1931_v17  ;;  %1938 = vlog2.f32 %v4314_v30  ;;  %4318 = vst [vmem:[#allocation125_spill] sm:$0xff] %v2900_v39  ;;  %v2910_v40 = vpop.xlane.xlu2 %719 }
 0x10c   : > { %v428_v41 = vmul.f32 %v388_v5, %v4306_v58  ;;  %v384_v11 = vmul.f32 0.6931472, %v1933_v44  ;;  %1940 = vlog2.f32 %v4315_v15  ;;  %v1935_v32 = vpop.eup %1934  ;;  %v1199_v5 = vmax.f32 %v2632_v52, %v2628_v48  ;;  %4319 = vst [vmem:[#allocation126_spill] sm:$0xff] %v2910_v40 }
 0x10d   : > { %v425_v14 = vmul.f32 %v382_v31, %v4307_v62  ;;  %1942 = vlog2.f32 %v4316_v0  ;;  %v1200_v44 = vmax.f32 %v2650_v20, %v2642_v19  ;;  %v402_v45 = vmul.f32 0.6931472, %v1935_v32 }
 0x10e   : > { %v790_v43 = vadd.f32 %v428_v41, %v427_v35  ;;  %v426_v17 = vmul.f32 %v384_v11, %v4309_v46  ;;  %1944 = vlog2.f32 %v4317_v33  ;;  %v1203_v58 = vmax.f32 %v1199_v5, %v2676_v22 }
 0x10f   : > { %794 = vadd.xlane.f32.xlu0 %v793_v42  ;;  %v1202_v42 = vmax.f32 %v2648_v51, %v2682_v2  ;;  %v1460_v31 = vadd.f32 %v1459_v25, %v425_v14  ;;  %v1205_v25 = vmax.f32 %v1201_v27, %v2718_v50  ;;  %v2915_v2 = vpop.xlane.xlu1 %725 }
 0x110   : > { %v1937_v53 = vpop.eup %1936  ;;  %v787_v11 = vadd.f32 %v426_v17, %v425_v14  ;;  %v1481_v57 = vadd.f32 %v1480_v21, %v426_v17  ;;  %v435_v21 = vmul.f32 %v402_v45, %v2610_v49  ;;  %v1204_v17 = vmax.f32 %v1200_v44, %v2720_v63 }
 0x111   : > { %v1939_v39 = vpop.eup %1938  ;;  %v1206_v48 = vmax.f32 %v1202_v42, %v2710_v18  ;;  %v1461_v19 = vadd.f32 %v1460_v31, %v427_v35  ;;  %v404_v52 = vmul.f32 0.6931472, %v1937_v53  ;;  %v4320_v31 = vld [vmem:[#allocation45_spill] sm:$0xff]  ;;  %vm949_vm7 = vweird.f32 %v2915_v2 }
 0x112   : > { %v1941_v20 = vpop.eup %1940  ;;  %v1482_v51 = vadd.f32 %v1481_v57, %v428_v41  ;;  %788 = vadd.xlane.f32.xlu1 %v787_v11  ;;  %v398_v32 = vmul.f32 0.6931472, %v1939_v39  ;;  %v441_v44 = vmul.f32 %v4320_v31, %v2364_v9  ;;  %v4323_v9 = vld [vmem:[#allocation21_spill] sm:$0xff] }
 0x113   : > { %791 = vadd.xlane.f32.xlu2 %v790_v43  ;;  %v1943_v14 = vpop.eup %1942  ;;  %v436_v5 = vmul.f32 %v404_v52, %v4313_v47  ;;  %v400_v3 = vmul.f32 0.6931472, %v1941_v20  ;;  %v1462_v43 = vadd.f32 %v1461_v19, %v2858_v36  ;;  %v1210_v53 = vmax.f32 %v1206_v48, %v2786_v4  ;;  %v4321_v36 = vld [vmem:[#allocation18_spill] sm:$0xff] }
 0x114   : > { %v1945_v35 = vpop.eup %1944  ;;  %v433_v27 = vmul.f32 %v398_v32, %v4314_v30  ;;  %v394_v42 = vmul.f32 0.6931472, %v1943_v14  ;;  %v1483_v57 = vadd.f32 %v1482_v51, %v2864_v37  ;;  %v1208_v52 = vmax.f32 %v1204_v17, %v2760_v26  ;;  %v4322_v48 = vld [vmem:[#allocation46_spill] sm:$0xff] }
 0x115   : > { %v802_v41 = vadd.f32 %v436_v5, %v435_v21  ;;  %v434_v45 = vmul.f32 %v400_v3, %v4315_v15  ;;  %v396_v39 = vmul.f32 0.6931472, %v1945_v35  ;;  %v1207_v20 = vmax.f32 %v1203_v58, %v2756_v6  ;;  %v2934_v35 = vpop.xlane.xlu0 %731  ;;  %v4324_v6 = vld [vmem:[#allocation22_spill] sm:$0xff] }
 0x116   : > { %v431_v19 = vmul.f32 %v394_v42, %v4316_v0  ;;  %v442_v11 = vmul.f32 %v4322_v48, %v4321_v36  ;;  %v1209_v32 = vmax.f32 %v1205_v25, %v2750_v12  ;;  %v1502_v3 = vadd.f32 %v1501_v13, %v441_v44  ;;  %v2940_v48 = vpop.xlane.xlu2 %728 }
 0x117   : > { %803 = vadd.xlane.f32.xlu0 %v802_v41  ;;  %v799_v51 = vadd.f32 %v434_v45, %v433_v27  ;;  %v432_v37 = vmul.f32 %v396_v39, %v4317_v33  ;;  %v443_v17 = vmul.f32 %v2508_v60, %v4323_v9  ;;  %v444_v36 = vmul.f32 %v2510_v61, %v4324_v6  ;;  %v4326_v39 = vld [vmem:[#allocation17_spill] sm:$0xff] }
 0x118   : > { %v1463_v14 = vadd.f32 %v1462_v43, %v431_v19  ;;  %v1523_v31 = vadd.f32 %v1522_v29, %v442_v11  ;;  %v1212_v58 = vmax.f32 %v1209_v32, %v1210_v53  ;;  %v1211_v25 = vmax.f32 %v1207_v20, %v1208_v52  ;;  %4325 = vst [vmem:[#allocation18_spill] sm:$0xff] %v2940_v48  ;;  %v4327_v29 = vld [vmem:[#allocation58_spill] sm:$0xff] }
 0x119   : > { %v796_v42 = vadd.f32 %v432_v37, %v431_v19  ;;  %v1484_v26 = vadd.f32 %v1483_v57, %v432_v37  ;;  %v445_v13 = vmul.f32 %v2538_v38, %v4326_v39  ;;  %v1503_v43 = vadd.f32 %v1502_v3, %v443_v17  ;;  %v2946_v19 = vpop.xlane.xlu1 %734  ;;  %v4331_v37 = vld [vmem:[#allocation19_spill] sm:$0xff]  ;;  %v4336_v3 = vld [vmem:[#allocation54_spill] sm:$0xff] }
 0x11a   : > { %v1464_v41 = vadd.f32 %v1463_v14, %v433_v27  ;;  %v811_v63 = vadd.f32 %v442_v11, %v441_v44  ;;  %v446_v53 = vmul.f32 %v4327_v29, %v2361_v7  ;;  %v1524_v32 = vadd.f32 %v1523_v31, %v444_v36  ;;  %4328 = vst [vmem:[#allocation21_spill] sm:$0xff] %v2946_v19  ;;  %v4333_v31 = vld [vmem:[#allocation20_spill] sm:$0xff]  ;;  %v4334_v44 = vld [vmem:[#allocation50_spill] sm:$0xff] }
 0x11b   : > { %800 = vadd.xlane.f32.xlu2 %v799_v51  ;;  %v1485_v50 = vadd.f32 %v1484_v26, %v434_v45  ;;  %797 = vadd.xlane.f32.xlu1 %v796_v42  ;;  %v1504_v6 = vadd.f32 %v1503_v43, %v445_v13  ;;  %v1213_v52 = vmax.f32 %v1211_v25, %v1212_v58  ;;  %v4332_v26 = vld [vmem:[#allocation47_spill] sm:$0xff]  ;;  %v4339_v25 = vld [vmem:[#allocation25_spill] sm:$0xff] }
 0x11c   : > { %v2948_v57 = vadd.f32 %v1464_v41, %v435_v21  ;;  %v808_v20 = vadd.f32 %v2882_v28, %v2870_v16  ;;  %v1525_v51 = vadd.f32 %v1524_v32, %v446_v53  ;;  %v447_v45 = vmul.f32 %v4332_v26, %v4331_v37  ;;  %v4335_v21 = vld [vmem:[#allocation27_spill] sm:$0xff] }
 0x11d   : > { %v2950_v27 = vadd.f32 %v1485_v50, %v436_v5  ;;  %v805_v7 = vadd.f32 %v2886_v56, %v2877_v24  ;;  %v448_v11 = vmul.f32 %v4334_v44, %v4333_v31  ;;  %v449_v14 = vmul.f32 %v4336_v3, %v4335_v21  ;;  %v4337_v5 = vld [vmem:[#allocation28_spill] sm:$0xff]  ;;  %v4338_v58 = vld [vmem:[#allocation55_spill] sm:$0xff]  ;;  %v2964_v42 = vpop.xlane.xlu0 %740  ;;  %v4340_v56 = vld [vmem:[#allocation26_spill] sm:$0xff] }
 0x11e   : > { %4329 = vst [vmem:[#allocation22_spill] sm:$0xff] %v2948_v57  ;;  %v1505_v9 = vadd.f32 %v1504_v6, %v447_v45  ;;  %v1214_v50 = vrot.slane %v1213_v52, 4  ;;  %v450_v16 = vmul.f32 %v4338_v58, %v4337_v5  ;;  %v452_v39 = vmul.f32 %v4302_v10, %v4340_v56  ;;  %v2970_v32 = vpop.xlane.xlu2 %737  ;;  %v4344_v57 = vld [vmem:[#allocation24_spill] sm:$0xff] }
 0x11f   : > { %4330 = vst [vmem:[#allocation17_spill] sm:$0xff] %v2950_v27  ;;  %812 = vadd.xlane.f32.xlu0 %v811_v63  ;;  %v1526_v28 = vadd.f32 %v1525_v51, %v448_v11  ;;  %v451_v63 = vmul.f32 %v4301_v34, %v4339_v25  ;;  %v820_v24 = vadd.f32 %v448_v11, %v447_v45  ;;  %v4343_v51 = vld [vmem:[#allocation23_spill] sm:$0xff]  ;;  %v4348_v56 = vld [vmem:[#allocation32_spill] sm:$0xff] }
 0x120   : > { %v1506_v41 = vadd.f32 %v1505_v9, %v449_v14  ;;  %4341 = vst [vmem:[#allocation19_spill] sm:$0xff] %v2970_v32  ;;  %v817_v37 = vadd.f32 %v446_v53, %v445_v13  ;;  %v453_v5 = vmul.f32 %v4299_v59, %v4343_v51  ;;  %v454_v9 = vmul.f32 %v4300_v55, %v4344_v57  ;;  %v4347_v53 = vld [vmem:[#allocation31_spill] sm:$0xff] }
 0x121   : > { %v1527_v43 = vadd.f32 %v1526_v28, %v450_v16  ;;  %v2972_v21 = vpop.xlane.xlu1 %743  ;;  %v814_v45 = vadd.f32 %v444_v36, %v443_v17  ;;  %v4346_v28 = vld [vmem:[#allocation34_spill] sm:$0xff]  ;;  %v823_v59 = vadd.f32 %v450_v16, %v449_v14 }
 0x122   : > { %v1507_v6 = vadd.f32 %v1506_v41, %v451_v63  ;;  %4342 = vst [vmem:[#allocation20_spill] sm:$0xff] %v2972_v21  ;;  %v456_v25 = vmul.f32 %v4298_v54, %v4346_v28  ;;  %v829_v17 = vadd.f32 %v454_v9, %v453_v5  ;;  %v4351_v28 = vld [vmem:[#allocation30_spill] sm:$0xff] }
 0x123   : > { %809 = vadd.xlane.f32.xlu2 %v808_v20  ;;  %806 = vadd.xlane.f32.xlu1 %v805_v7  ;;  %v1215_v20 = vmax.f32 %v1213_v52, %v1214_v50  ;;  %v1528_v31 = vadd.f32 %v1527_v43, %v452_v39  ;;  %v4345_v7 = vld [vmem:[#allocation33_spill] sm:$0xff]  ;;  %v457_v50 = vmul.f32 %v4307_v62, %v4347_v53  ;;  %v4354_v62 = vld [vmem:[#allocation39_spill] sm:$0xff] }
 0x124   : > { %v455_v11 = vmul.f32 %v4297_v8, %v4345_v7  ;;  %v1508_v41 = vadd.f32 %v1507_v6, %v453_v5  ;;  %v458_v43 = vmul.f32 %v4309_v46, %v4348_v56  ;;  %v4352_v6 = vld [vmem:[#allocation62_spill] sm:$0xff]  ;;  %v826_v8 = vadd.f32 %v452_v39, %v451_v63 }
 0x125   : > { %v1529_v52 = vadd.f32 %v1528_v31, %v454_v9  ;;  %v1216_v13 = vrot.slane %v1215_v20, 2  ;;  %v2986_v36 = vpop.xlane.xlu0 %749  ;;  %v460_v31 = vmul.f32 %v4352_v6, %v4351_v28  ;;  %v4355_v56 = vld [vmem:[#allocation66_spill] sm:$0xff] }
 0x126   : > { %v1509_v51 = vadd.f32 %v1508_v41, %v455_v11  ;;  %4349 = vst [vmem:[#allocation27_spill] sm:$0xff] %v2986_v36  ;;  %v2992_v53 = vpop.xlane.xlu2 %746  ;;  %v461_v41 = vmul.f32 %v4355_v56, %v4354_v62  ;;  %v4360_v62 = vld [vmem:[#allocation35_spill] sm:$0xff] }
 0x127   : > { %821 = vadd.xlane.f32.xlu0 %v820_v24  ;;  %v1530_v57 = vadd.f32 %v1529_v52, %v456_v25  ;;  %v4350_v24 = vld [vmem:[#allocation29_spill] sm:$0xff]  ;;  %v1217_v55 = vmax.f32 %v1215_v20, %v1216_v13  ;;  %4353 = vst [vmem:[#allocation28_spill] sm:$0xff] %v2992_v53  ;;  %v4356_v52 = vld [vmem:[#allocation40_spill] sm:$0xff]  ;;  %v465_v28 = vmul.f32 %v4314_v30, %v4360_v62 }
 0x128   : > { %v459_v7 = vmul.f32 %v4305_v23, %v4350_v24  ;;  %v1510_v54 = vadd.f32 %v1509_v51, %v457_v50  ;;  %v4358_v23 = vld [vmem:[#allocation37_spill] sm:$0xff] }
 0x129   : > { %v2998_v24 = vpop.xlane.xlu1 %752  ;;  %v463_v51 = vmul.f32 %v4316_v0, %v4358_v23  ;;  %v1218_v13 = vrot.slane %v1217_v55, 1  ;;  %v4363_v0 = vld [vmem:[#allocation44_spill] sm:$0xff] }
 0x12a   : > { %v1511_v9 = vadd.f32 %v1510_v54, %v459_v7  ;;  %v838_v16 = vadd.f32 %v460_v31, %v459_v7 }
 0x12b   : > { %818 = vadd.xlane.f32.xlu2 %v817_v37  ;;  %815 = vadd.xlane.f32.xlu1 %v814_v45  ;;  %v1531_v37 = vadd.f32 %v1530_v57, %v458_v43  ;;  %v4357_v45 = vld [vmem:[#allocation67_spill] sm:$0xff]  ;;  %v4359_v57 = vld [vmem:[#allocation38_spill] sm:$0xff] }
 0x12c   : > { %v462_v5 = vmul.f32 %v4357_v45, %v4356_v52  ;;  %v464_v63 = vmul.f32 %v4317_v33, %v4359_v57  ;;  %v1512_v39 = vadd.f32 %v1511_v9, %v461_v41  ;;  %v4361_v52 = vld [vmem:[#allocation36_spill] sm:$0xff]  ;;  %v468_v57 = vmul.f32 %v4313_v47, %v4363_v0 }
 0x12d   : > { %v1532_v46 = vadd.f32 %v1531_v37, %v460_v31  ;;  %v466_v54 = vmul.f32 %v4315_v15, %v4361_v52  ;;  %v4362_v37 = vld [vmem:[#allocation43_spill] sm:$0xff]  ;;  %v835_v33 = vadd.f32 %v458_v43, %v457_v50  ;;  %v3012_v45 = vpop.xlane.xlu0 %758  ;;  %v2219_v0 = vmov 0  }
 0x12e   : > { %v467_v23 = vmul.f32 %v2610_v49, %v4362_v37  ;;  %4364 = vst [vmem:[#allocation25_spill] sm:$0xff] %v3012_v45  ;;  %v3020_v7 = vpop.xlane.xlu2 %755  ;;  %1816 = vset.pattern.permute.xlu0 %v2219_v0  ;;  %1815 = vset.pattern.permute.xlu2 %v2219_v0  ;;  %v844_v43 = vadd.f32 %v464_v63, %v463_v51 }
 0x12f   : > { %830 = vadd.xlane.f32.xlu0 %v829_v17  ;;  %v1533_v20 = vadd.f32 %v1532_v46, %v462_v5  ;;  %v1513_v17 = vadd.f32 %v1512_v39, %v463_v51  ;;  %v3018_v39 = vld [vmem:[#allocation6] sm:$0x1]  ;;  %4367 = vst [vmem:[#allocation24_spill] sm:$0xff] %v3020_v7  ;;  %1817 = vset.pattern.permute.xlu1 %v2219_v0 }
 0x131   : > { %v1534_v14 = vadd.f32 %v1533_v20, %v464_v63  ;;  %v1514_v9 = vadd.f32 %v1513_v17, %v465_v28  ;;  %v3022_v31 = vpop.xlane.xlu1 %761  ;;  %v4370_v17 = vld [vmem:[#allocation79_spill] sm:$0xff]  ;;  %v850_v63 = vadd.f32 %v468_v57, %v467_v23 }
 0x132   : > { %4368 = vst [vmem:[#allocation33_spill] sm:$0xff] %v3022_v31 }
 0x133   : > { %827 = vadd.xlane.f32.xlu2 %v826_v8  ;;  %824 = vadd.xlane.f32.xlu1 %v823_v59  ;;  %v1535_v46 = vadd.f32 %v1534_v14, %v466_v54  ;;  %v1219_v8 = vmax.f32 %v1217_v55, %v1218_v13  ;;  %v3014_v62 = vadd.f32 %v1514_v9, %v467_v23  ;;  %v4373_v9 = vld [vmem:[#allocation123_spill] sm:$0xff] }
 0x134   : > { %v832_v59 = vadd.f32 %v456_v25, %v455_v11  ;;  %v847_v55 = vadd.f32 %v466_v54, %v465_v28  ;;  %v841_v11 = vadd.f32 %v462_v5, %v461_v41  ;;  %v4371_v54 = vld [vmem:[#allocation124_spill] sm:$0xff]  ;;  %vm874_vm9 = vweird.f32 %v4373_v9 }
 0x135   : > { %4365 = vst [vmem:[#allocation26_spill] sm:$0xff] %v3014_v62  ;;  %v3016_v30 = vadd.f32 %v1535_v46, %v468_v57  ;;  %v3025_v50 = vmax.f32 %v3018_v39, %v1219_v8  ;;  %1946 = vrcp.f32 %v4371_v54  ;;  %v4374_v46 = vld [vmem:[#allocation122_spill] sm:$0xff]  ;;  %vm904_vm3 = vweird.f32 %v4371_v54 }
 0x136   : > { %v3034_v13 = vpop.xlane.xlu2 %764  ;;  %1948 = vrcp.f32 %v2915_v2 }
 0x137   : > { %4366 = vst [vmem:[#allocation23_spill] sm:$0xff] %v3016_v30  ;;  %839 = vadd.xlane.f32.xlu0 %v838_v16  ;;  %v3028_v20 = vperm.slane %v3025_v50, 0  ;;  %v4372_v16 = vld [vmem:[#allocation76_spill] sm:$0xff] }
 0x138   : > { %4369 = vst [vmem:[#allocation34_spill] sm:$0xff] %v3034_v13 }
 0x139   : > { %v1225_v28 = vsub.f32 %v4370_v17, %v3028_v20  ;;  %1449 = vst.msk [vmem:[#allocation6] sm:$0x1] %vm1196_vm2, %v3025_v50  ;;  %v1224_v37 = vsub.f32 %v4372_v16, %v3028_v20  ;;  %v1232_v57 = vsub.f32 %v2676_v22, %v3028_v20 }
 0x13b   : > { %836 = vadd.xlane.f32.xlu2 %v835_v33  ;;  %833 = vadd.xlane.f32.xlu1 %v832_v59  ;;  %v1239_v33 = vsub.f32 %v2786_v4, %v3028_v20  ;;  %v1242_v5 = vmul.f32 1.442695, %v1225_v28  ;;  %v3056_v8 = vpop.eup %1946  ;;  %v1240_v59 = vmul.f32 1.442695, %v1224_v37 }
 0x13c   : > { %v3059_v0 = vpop.eup %1948  ;;  %vm905_vm4 = vweird.f32 %v3056_v8 }
 0x13d   : > { %v1270_v51 = vmul.f32 1.442695, %v1239_v33  ;;  %v1256_v33 = vmul.f32 1.442695, %v1232_v57  ;;  %v1235_v57 = vsub.f32 %v2710_v18, %v3028_v20  ;;  %v3134_v13 = vmul.f32 %v3059_v0, %v2915_v2  ;;  %vm3275_vm5 = vmor %vm904_vm3, %vm905_vm4 }
 0x13e   : > { %vm950_vm8 = vweird.f32 %v3059_v0 }
 0x13f   : > { %848 = vadd.xlane.f32.xlu0 %v847_v55  ;;  %1950 = vpow2.f32 %v1270_v51  ;;  %v1262_v30 = vmul.f32 1.442695, %v1235_v57  ;;  %vm3344_vm11 = vmor %vm949_vm7, %vm950_vm8 }
 0x140   : > { %1952 = vrcp.f32 %v4373_v9 }
 0x141   : > { %1954 = vpow2.f32 %v1242_v5  ;;  %v4377_v5 = vld [vmem:[#allocation78_spill] sm:$0xff] }
 0x142   : > { %v3030_v25 = vpop.xlane.xlu0 %620  ;;  %1956 = vrcp.f32 %v4374_v46  ;;  %v1227_v37 = vsub.f32 %v4377_v5, %v3028_v20 }
 0x143   : > { %845 = vadd.xlane.f32.xlu2 %v844_v43  ;;  %842 = vadd.xlane.f32.xlu1 %v841_v11  ;;  %1958 = vrcp.f32 %v2946_v19  ;;  %v4376_v43 = vld [vmem:[#allocation125_spill] sm:$0xff] }
 0x144   : > { %v3036_v52 = vpop.xlane.xlu1 %614  ;;  %1960 = vrcp.f32 %v2910_v40 }
 0x145   : > { %v3062_v55 = vpop.eup %1950  ;;  %1962 = vrcp.f32 %v4376_v43 }
 0x146   : > { %4375 = vst [vmem:[#allocation31_spill] sm:$0xff] %v3062_v55  ;;  %v3067_v28 = vpop.eup %1952  ;;  %1964 = vrcp.f32 %v2972_v21 }
 0x147   : > { %v1955_v51 = vpop.eup %1954  ;;  %1966 = vpow2.f32 %v1240_v59  ;;  %v1226_v59 = vsub.f32 %v2630_v1, %v3028_v20  ;;  %v3139_v18 = vmul.f32 %v3067_v28, %v4373_v9  ;;  %vm875_vm10 = vweird.f32 %v3067_v28 }
 0x148   : > { %v3074_v47 = vpop.eup %1956  ;;  %1968 = vrcp.f32 %v2940_v48  ;;  %vm3359_vm12 = vmor %vm874_vm9, %vm875_vm10 }
 0x149   : > { %4378 = vst [vmem:[#allocation32_spill] sm:$0xff] %v3074_v47  ;;  %v3077_v15 = vpop.eup %1958  ;;  %1970 = vpow2.f32 %v1256_v33  ;;  %v1244_v34 = vmul.f32 1.442695, %v1226_v59  ;;  %v1238_v59 = vsub.f32 %v2750_v12, %v3028_v20 }
 0x14a   : > { %v3041_v41 = vpop.xlane.xlu0 %629  ;;  %4379 = vst [vmem:[#allocation29_spill] sm:$0xff] %v3077_v15  ;;  %v3083_v6 = vpop.eup %1960  ;;  %1972 = vrcp.f32 %v2934_v35 }
 0x14b   : > { %851 = vadd.xlane.f32.xlu1 %v850_v63  ;;  %4380 = vst [vmem:[#allocation30_spill] sm:$0xff] %v3083_v6  ;;  %v3088_v56 = vpop.eup %1962  ;;  %1974 = vrcp.f32 %v2998_v24  ;;  %v1268_v12 = vmul.f32 1.442695, %v1238_v59 }
 0x14c   : > { %v3046_v14 = vpop.xlane.xlu1 %623  ;;  %v3091_v62 = vpop.eup %1964  ;;  %1976 = vrcp.f32 %v2970_v32  ;;  %vm935_vm7 = vweird.f32 %v3088_v56 }
 0x14d   : > { %4381 = vst [vmem:[#allocation39_spill] sm:$0xff] %v3091_v62  ;;  %v1967_v33 = vpop.eup %1966  ;;  %1978 = vrcp.f32 %v2964_v42 }
 0x14e   : > { %v3051_v23 = vpop.xlane.xlu2 %617  ;;  %v3097_v27 = vpop.eup %1968  ;;  %1980 = vrcp.f32 %v2992_v53 }
 0x14f   : > { %4382 = vst [vmem:[#allocation40_spill] sm:$0xff] %v3097_v27  ;;  %v1971_v58 = vpop.eup %1970 }
 0x150   : > { %v3104_v26 = vpop.eup %1972 }
 0x151   : > { %4385 = vst [vmem:[#allocation38_spill] sm:$0xff] %v3104_v26  ;;  %v3107_v29 = vpop.eup %1974 }
 0x152   : > { %v3065_v11 = vpop.xlane.xlu0 %638  ;;  %4386 = vst [vmem:[#allocation35_spill] sm:$0xff] %v3107_v29 }
 0x153   : > { %1279 = vperm.xlu0 %1816, %v1955_v51   ;;  %v1246_v51 = vmul.f32 1.442695, %v1227_v37  ;;  %v4384_v37 = vld [vmem:[#allocation75_spill] sm:$0xff] }
 0x154   : > { %v3070_v63 = vpop.xlane.xlu1 %632  ;;  %v1228_v3 = vsub.f32 %v4384_v37, %v3028_v20 }
 0x155   : > { %1982 = vpow2.f32 %v1246_v51  ;;  %v4389_v51 = vld [vmem:[#allocation77_spill] sm:$0xff] }
 0x156   : > { %v3079_v49 = vpop.xlane.xlu2 %626  ;;  %1984 = vrcp.f32 %v2986_v36  ;;  %v1229_v38 = vsub.f32 %v4389_v51, %v3028_v20  ;;  %v1248_v60 = vmul.f32 1.442695, %v1228_v3 }
 0x157   : > { %1986 = vpow2.f32 %v1262_v30 }
 0x158   : > { %1988 = vpow2.f32 %v1244_v34  ;;  %v3130_v34 = vmul.f32 %v3056_v8, %v4371_v54  ;;  %v1250_v3 = vmul.f32 1.442695, %v1229_v38  ;;  %v3155_v38 = vmul.f32 %v3083_v6, %v2910_v40 }
 0x159   : > { %1990 = vrcp.f32 %v3020_v7  ;;  %v3184_v6 = vmul.f32 %v3091_v62, %v2972_v21 }
 0x15a   : > { %v3095_v10 = vpop.xlane.xlu0 %647  ;;  %1992 = vlog2.f32 %v4373_v9 }
 0x15b   : > { %1274 = vperm.xlu2 %1815, %v1967_v33   ;;  %1314 = vperm.xlu0 %1816, %v1971_v58   ;;  %v3113_v33 = vpop.eup %1976  ;;  %1994 = vlog2.f32 %v4371_v54  ;;  %4402 = vst [vmem:[#allocation127_spill] sm:$0xff] %v3184_v6 }
 0x15c   : > { %v3100_v44 = vpop.xlane.xlu1 %641  ;;  %4388 = vst [vmem:[#allocation43_spill] sm:$0xff] %v3113_v33  ;;  %v3117_v61 = vpop.eup %1978  ;;  %1996 = vlog2.f32 %v2910_v40  ;;  %v4401_v40 = vld [vmem:[#allocation85_spill] sm:$0xff]  ;;  %v3203_v62 = vmul.f32 %v3113_v33, %v2970_v32 }
 0x15d   : > { %4383 = vst [vmem:[#allocation37_spill] sm:$0xff] %v3100_v44  ;;  %v3120_v58 = vpop.eup %1980  ;;  %1998 = vpow2.f32 %v1248_v60 }
 0x15e   : > { %v3109_v57 = vpop.xlane.xlu2 %635  ;;  %4390 = vst [vmem:[#allocation44_spill] sm:$0xff] %v3117_v61  ;;  %v1983_v4 = vpop.eup %1982  ;;  %2000 = vlog2.f32 %v4374_v46  ;;  %v3217_v33 = vmul.f32 %v3120_v58, %v2992_v53 }
 0x15f   : > { %4387 = vst [vmem:[#allocation36_spill] sm:$0xff] %v3109_v57  ;;  %v3126_v45 = vpop.eup %1984  ;;  %v3147_v57 = vmul.f32 %v3074_v47, %v4374_v46  ;;  %2002 = vpow2.f32 %v1268_v12  ;;  %v1231_v46 = vsub.f32 %v4401_v40, %v3028_v20 }
 0x160   : > { %4391 = vst [vmem:[#allocation124_spill] sm:$0xff] %v3120_v58  ;;  %v1987_v31 = vpop.eup %1986  ;;  %2004 = vpow2.f32 %v1250_v3 }
 0x161   : > { %4393 = vst [vmem:[#allocation123_spill] sm:$0xff] %v3126_v45  ;;  %v1989_v55 = vpop.eup %1988  ;;  %2006 = vlog2.f32 %v2915_v2 }
 0x162   : > { %v3124_v30 = vpop.xlane.xlu0 %656  ;;  %v3158_v60 = vpop.eup %1990  ;;  %2008 = vlog2.f32 %v4376_v43  ;;  %4405 = vst [vmem:[#allocation130_spill] sm:$0xff] %v3203_v62 }
 0x163   : > { %4392 = vst [vmem:[#allocation76_spill] sm:$0xff] %v3124_v30  ;;  %1289 = vperm.xlu2 %1815, %v1983_v4   ;;  %v4395_v30 = vld [vmem:[#allocation86_spill] sm:$0xff]  ;;  %v3151_v4 = vmul.f32 %v3077_v15, %v2946_v19  ;;  %1329 = vperm.xlu0 %1816, %v1987_v31   ;;  %v1993_v47 = vpop.eup %1992  ;;  %v901_v15 = vsub.f32 1.0, %v3130_v34  ;;  %2010 = vlog2.f32 %v2940_v48  ;;  %v3199_v34 = vmul.f32 %v3107_v29, %v2998_v24  ;;  %v4408_v29 = vld [vmem:[#allocation96_spill] sm:$0xff] }
 0x164   : > { %v3141_v59 = vpop.xlane.xlu1 %650  ;;  %v1230_v37 = vsub.f32 %v4395_v30, %v3028_v20  ;;  %4396 = vst [vmem:[#allocation77_spill] sm:$0xff] %v3158_v60  ;;  %v4398_v30 = vld [vmem:[#allocation51_spill] sm:$0xff]  ;;  %1284 = vperm.xlu1 %1817, %v1989_v55   ;;  %v1995_v31 = vpop.eup %1994  ;;  %2012 = vlog2.f32 %v2946_v19  ;;  %v4414_v19 = vld [vmem:[#allocation104_spill] sm:$0xff] }
 0x165   : > { %4394 = vst [vmem:[#allocation78_spill] sm:$0xff] %v3141_v59  ;;  %v4397_v59 = vld [vmem:[#allocation41_spill] sm:$0xff]  ;;  %v3176_v12 = vpop.eup %1996 }
 0x166   : > { %v3162_v22 = vadd.f32 %v4398_v30, %v4397_v59  ;;  %v3164_v17 = vpop.xlane.xlu2 %644  ;;  %v3173_v30 = vmul.f32 %v3088_v56, %v4376_v43  ;;  %v1252_v55 = vmul.f32 1.442695, %v1230_v37  ;;  %v1999_v44 = vpop.eup %1998  ;;  %v3192_v37 = vmul.f32 %v3104_v26, %v2934_v35  ;;  %4404 = vst [vmem:[#allocation129_spill] sm:$0xff] %v3199_v34 }
 0x167   : > { %4400 = vst [vmem:[#allocation51_spill] sm:$0xff] %v3164_v17  ;;  %v2001_v3 = vpop.eup %2000  ;;  %v1233_v17 = vsub.f32 %v4408_v29, %v3028_v20  ;;  %v3246_v34 = vmul.f32 0.6931472, %v1995_v31  ;;  %v3258_v6 = vmul.f32 0.6931472, %v3176_v12 }
 0x168   : > { %4399 = vst [vmem:[#allocation41_spill] sm:$0xff] %v3162_v22  ;;  %v3188_v22 = vmul.f32 %v3097_v27, %v2940_v48  ;;  %v1254_v27 = vmul.f32 1.442695, %v1231_v46  ;;  %v2003_v40 = vpop.eup %2002  ;;  %v3209_v48 = vmul.f32 %v3117_v61, %v2964_v42  ;;  %2014 = vpow2.f32 %v1252_v55 }
 0x169   : > { %v2005_v43 = vpop.eup %2004  ;;  %4409 = vst [vmem:[#allocation133_spill] sm:$0xff] %v3217_v33  ;;  %v3225_v46 = vmul.f32 %v3158_v60, %v3020_v7  ;;  %2016 = vlog2.f32 %v3030_v25  ;;  %v1258_v61 = vmul.f32 1.442695, %v1233_v17  ;;  %v3244_v60 = vmul.f32 0.6931472, %v1993_v47 }
 0x16a   : > { %v3195_v59 = vpop.xlane.xlu0 %767  ;;  %4406 = vst [vmem:[#allocation131_spill] sm:$0xff] %v3209_v48  ;;  %v2007_v55 = vpop.eup %2006  ;;  %2018 = vlog2.f32 %v3036_v52  ;;  %v902_v52 = vmul.f32 %v3056_v8, %v901_v15  ;;  %v1236_v47 = vsub.f32 %v4414_v19, %v3028_v20  ;;  %v908_v33 = vand.u32 2147483647, %v4371_v54 }
 0x16b   : > { %4403 = vst [vmem:[#allocation128_spill] sm:$0xff] %v3195_v59  ;;  %1294 = vperm.xlu2 %1815, %v1999_v44   ;;  %v3221_v44 = vmul.f32 %v3126_v45, %v2986_v36  ;;  %1344 = vperm.xlu0 %1816, %v2003_v40   ;;  %v2009_v45 = vpop.eup %2008  ;;  %2020 = vpow2.f32 %v1254_v27  ;;  %v4412_v40 = vld [vmem:[#allocation95_spill] sm:$0xff] }
 0x16c   : > { %v3211_v59 = vpop.xlane.xlu1 %659  ;;  %4411 = vst [vmem:[#allocation135_spill] sm:$0xff] %v3225_v46  ;;  %1299 = vperm.xlu1 %1817, %v2005_v43   ;;  %v1234_v25 = vsub.f32 %v4412_v40, %v3028_v20  ;;  %v2011_v29 = vpop.eup %2010  ;;  %2022 = vlog2.f32 %v2972_v21  ;;  %v903_v46 = vadd.f32 %v3056_v8, %v902_v52  ;;  %v3279_v21 = vmul.f32 0.6931472, %v2009_v45 }
 0x16d   : > { %4407 = vst [vmem:[#allocation132_spill] sm:$0xff] %v3211_v59  ;;  %v2013_v43 = vpop.eup %2012  ;;  %2024 = vlog2.f32 %v3041_v41  ;;  %v910_v59 = vand.u32 2147483648, %v4371_v54  ;;  %v1264_v54 = vmul.f32 1.442695, %v1236_v47  ;;  %vm3292_vm6 = vcmp.eq.f32.partialorder %v908_v33, 8.507059e+37 }
 0x16e   : > { %4410 = vst [vmem:[#allocation134_spill] sm:$0xff] %v3221_v44  ;;  %v3232_v58 = vpop.xlane.xlu2 %653  ;;  %v2015_v27 = vpop.eup %2014  ;;  %2026 = vlog2.f32 %v2934_v35  ;;  %v1260_v17 = vmul.f32 1.442695, %v1234_v25  ;;  %v3265_v25 = vmul.f32 0.6931472, %v2001_v3  ;;  %v907_v45 = vsel %vm3275_vm5, %v3056_v8, %v903_v46 }
 0x16f   : > { %v2017_v15 = vpop.eup %2016  ;;  %2028 = vpow2.f32 %v1258_v61  ;;  %v3286_v3 = vmul.f32 0.6931472, %v2011_v29  ;;  %v4423_v33 = vsub.f32 1.0, %v3134_v13 }
 0x170   : > { %v2019_v31 = vpop.eup %2018  ;;  %2030 = vlog2.f32 %v3046_v14  ;;  %v666_v52 = vmul.f32 0.6931472, %v2017_v15 }
 0x171   : > { %v2021_v44 = vpop.eup %2020  ;;  %2032 = vlog2.f32 %v2970_v32  ;;  %v662_v48 = vmul.f32 0.6931472, %v2019_v31  ;;  %v3296_v32 = vmul.f32 0.6931472, %v2013_v43  ;;  %v947_v46 = vmul.f32 %v3059_v0, %v4423_v33 }
 0x172   : > { %v3249_v26 = vpop.xlane.xlu0 %776  ;;  %v2023_v12 = vpop.eup %2022  ;;  %2034 = vpow2.f32 %v1260_v17 }
 0x173   : > { %4413 = vst [vmem:[#allocation95_spill] sm:$0xff] %v3249_v26  ;;  %1304 = vperm.xlu2 %1815, %v2015_v27   ;;  %v3267_v27 = vmul.f32 0.6931472, %v2007_v55  ;;  %v4415_v26 = vld [vmem:[#allocation106_spill] sm:$0xff]  ;;  %v911_v55 = vor.u32 1.1754944e-38, %v910_v59  ;;  %2036 = vlog2.f32 %v3051_v23  ;;  %v3302_v59 = vadd.f32 %v666_v52, %v2630_v1 }
 0x174   : > { %v3260_v41 = vpop.xlane.xlu1 %770  ;;  %v1237_v62 = vsub.f32 %v4415_v26, %v3028_v20  ;;  %1309 = vperm.xlu1 %1817, %v2021_v44   ;;  %v1427_v20 = vsub.f32 %v3018_v39, %v3025_v50  ;;  %v2025_v26 = vpop.eup %2024  ;;  %4420 = vst [vmem:[#allocation104_spill] sm:$0xff] %v3296_v32  ;;  %v3298_v29 = vmul.f32 0.6931472, %v2023_v12  ;;  %2038 = vlog2.f32 %v2998_v24 }
 0x175   : > { %v2027_v15 = vpop.eup %2026  ;;  %2040 = vlog2.f32 %v2964_v42  ;;  %v672_v17 = vmul.f32 0.6931472, %v2025_v26  ;;  %v4424_v1 = vsub.f32 1.0, %v3139_v18  ;;  %v3319_v61 = vadd.f32 %v662_v48, %v4372_v16 }
 0x176   : > { %v3282_v14 = vpop.xlane.xlu2 %773  ;;  %4421 = vst [vmem:[#allocation136_spill] sm:$0xff] %v3298_v29  ;;  %v1266_v39 = vmul.f32 1.442695, %v1237_v62  ;;  %v2029_v50 = vpop.eup %2028  ;;  %v1428_v8 = vmul.f32 1.442695, %v1427_v20  ;;  %2042 = vlog2.f32 %v3065_v11  ;;  %v3313_v62 = vsel %vm3292_vm6, %v911_v55, %v907_v45  ;;  %v4439_v55 = vld [vmem:[#allocation79_spill] sm:$0xff] }
 0x177   : > { %v2031_v43 = vpop.eup %2030  ;;  %v872_v47 = vmul.f32 %v3067_v28, %v4424_v1  ;;  %2044 = vpow2.f32 %v1264_v54  ;;  %v955_v18 = vand.u32 2147483648, %v2915_v2  ;;  %v880_v16 = vand.u32 2147483648, %v4373_v9 }
 0x178   : > { %v2033_v31 = vpop.eup %2032  ;;  %2046 = vlog2.f32 %v3070_v63  ;;  %v668_v12 = vmul.f32 0.6931472, %v2031_v43  ;;  %v948_v52 = vadd.f32 %v3059_v0, %v947_v46  ;;  %v3337_v20 = vadd.f32 %v672_v17, %v4389_v51 }
 0x179   : > { %v2035_v26 = vpop.eup %2034  ;;  %2048 = vlog2.f32 %v2992_v53  ;;  %v873_v54 = vadd.f32 %v3067_v28, %v872_v47  ;;  %v953_v45 = vand.u32 2147483647, %v2915_v2  ;;  %v878_v46 = vand.u32 2147483647, %v4373_v9 }
 0x17a   : > { %v3305_v23 = vpop.xlane.xlu0 %785  ;;  %v2037_v11 = vpop.eup %2036  ;;  %2050 = vpow2.f32 %v1266_v39  ;;  %v3353_v39 = vmul.f32 0.6931472, %v2027_v15  ;;  %v3365_v17 = vmul.f32 0.6931472, %v2033_v31  ;;  %v956_v1 = vor.u32 1.1754944e-38, %v955_v18 }
 0x17b   : > { %4422 = vst [vmem:[#allocation137_spill] sm:$0xff] %v3305_v23  ;;  %1319 = vperm.xlu2 %1815, %v2029_v50   ;;  %v3334_v63 = vpop.eup %2038  ;;  %v664_v43 = vmul.f32 0.6931472, %v2037_v11  ;;  %2052 = vlog2.f32 %v3079_v49  ;;  %v3368_v15 = vadd.f32 %v668_v12, %v4377_v5  ;;  %v881_v51 = vor.u32 1.1754944e-38, %v880_v16  ;;  %v4434_v11 = vld [vmem:[#allocation37_spill] sm:$0xff]  ;;  %v4436_v12 = vld [vmem:[#allocation32_spill] sm:$0xff] }
 0x17c   : > { %v3324_v13 = vpop.xlane.xlu1 %779  ;;  %1324 = vperm.xlu1 %1817, %v2035_v26   ;;  %4425 = vst [vmem:[#allocation138_spill] sm:$0xff] %v3334_v63  ;;  %v2041_v44 = vpop.eup %2040  ;;  %2054 = vlog2.f32 %v3095_v10  ;;  %v952_v9 = vsel %vm3344_vm11, %v3059_v0, %v948_v52  ;;  %v877_v5 = vsel %vm3359_vm12, %v3067_v28, %v873_v54  ;;  %vm3381_vm13 = vcmp.eq.f32.partialorder %v953_v45, 8.507059e+37  ;;  %v4441_v45 = vld [vmem:[#allocation30_spill] sm:$0xff]  ;;  %v4454_v23 = vld [vmem:[#allocation31_spill] sm:$0xff] }
 0x17d   : > { %v2043_v2 = vpop.eup %2042  ;;  %4430 = vst [vmem:[#allocation139_spill] sm:$0xff] %v3365_v17  ;;  %2056 = vpow2.f32 %v1428_v8  ;;  %v4435_v0 = vsub.f32 1.0, %v3147_v57  ;;  %vm3389_vm14 = vcmp.eq.f32.partialorder %v878_v46, 8.507059e+37  ;;  %v3394_v33 = vadd.f32 %v664_v43, %v4439_v55  ;;  %v4447_v57 = vld [vmem:[#allocation36_spill] sm:$0xff]  ;;  %v4453_v52 = vld [vmem:[#allocation126_spill] sm:$0xff] }
 0x17e   : > { %v3330_v48 = vpop.xlane.xlu2 %782  ;;  %v2045_v47 = vpop.eup %2044  ;;  %v678_v18 = vmul.f32 0.6931472, %v2043_v2  ;;  %2058 = vlog2.f32 %v4434_v11  ;;  %v3396_v28 = vmul.f32 0.6931472, %v2041_v44  ;;  %v4440_v54 = vsub.f32 1.0, %v3155_v38  ;;  %v4443_v11 = vld [vmem:[#allocation122_spill] sm:$0xff] }
 0x17f   : > { %v2047_v50 = vpop.eup %2046  ;;  %v887_v16 = vmul.f32 %v4436_v12, %v4435_v0  ;;  %2060 = vlog2.f32 %v2986_v36  ;;  %vm889_vm15 = vweird.f32 %v4443_v11  ;;  %vm890_vm0 = vweird.f32 %v4436_v12 }
 0x180   : > { %v2049_v10 = vpop.eup %2048  ;;  %v917_v2 = vmul.f32 %v4441_v45, %v4440_v54  ;;  %v895_v38 = vand.u32 2147483648, %v4443_v11  ;;  %v3415_v55 = vsel %vm3389_vm14, %v881_v51, %v877_v5  ;;  %v4445_v54 = vld [vmem:[#allocation84_spill] sm:$0xff]  ;;  %2062 = vlog2.f32 %v4447_v57  ;;  %vm3434_vm1 = vmor %vm889_vm15, %vm890_vm0  ;;  %v4451_v5 = vld [vmem:[#allocation29_spill] sm:$0xff] }
 0x181   : > { %v2051_v8 = vpop.eup %2050  ;;  %v3408_v44 = vmul.f32 0.6931472, %v2049_v10  ;;  %v3422_v49 = vadd.f32 %v678_v18, %v4445_v54  ;;  %v888_v10 = vadd.f32 %v4436_v12, %v887_v16  ;;  %v893_v63 = vand.u32 2147483647, %v4443_v11  ;;  %v4452_v57 = vld [vmem:[#allocation86_spill] sm:$0xff] }
 0x182   : > { %v3371_v26 = vpop.xlane.xlu0 %794  ;;  %v2053_v43 = vpop.eup %2052  ;;  %2064 = vlog2.f32 %v3020_v7  ;;  %vm919_vm3 = vweird.f32 %v4453_v52  ;;  %vm920_vm4 = vweird.f32 %v4441_v45  ;;  %vm995_vm12 = vweird.f32 %v4451_v5 }
 0x183   : > { %4431 = vst [vmem:[#allocation140_spill] sm:$0xff] %v3371_v26  ;;  %1334 = vperm.xlu2 %1815, %v2045_v47   ;;  %v674_v47 = vmul.f32 0.6931472, %v2047_v50  ;;  %v3419_v50 = vsel %vm3381_vm13, %v956_v1, %v952_v9  ;;  %v918_v1 = vadd.f32 %v4441_v45, %v917_v2  ;;  %v4450_v9 = vsub.f32 1.0, %v3151_v4  ;;  %vm3471_vm8 = vmor %vm919_vm3, %vm920_vm4 }
 0x184   : > { %1339 = vperm.xlu1 %1817, %v2051_v8   ;;  %v2055_v8 = vpop.eup %2054  ;;  %4446 = vst [vmem:[#allocation79_spill] sm:$0xff] %v3422_v49  ;;  %v670_v16 = vmul.f32 0.6931472, %v2053_v43  ;;  %v4455_v2 = vsub.f32 1.0, %v3173_v30  ;;  %vm3459_vm5 = vcmp.eq.f32.partialorder %v893_v63, 8.507059e+37  ;;  %vm979_vm14 = vweird.f32 %v2934_v35 }
 0x185   : > { %v3410_v0 = vpop.xlane.xlu1 %788  ;;  %v2057_v26 = vpop.eup %2056  ;;  %v992_v31 = vmul.f32 %v4451_v5, %v4450_v9  ;;  %v3443_v54 = vadd.f32 %v674_v47, %v4452_v57  ;;  %v684_v7 = vmul.f32 0.6931472, %v2055_v8  ;;  %v925_v9 = vand.u32 2147483648, %v4453_v52  ;;  %v4486_v8 = vld [vmem:[#allocation18_spill] sm:$0xff] }
 0x186   : > { %v3404_v46 = vpop.xlane.xlu2 %791  ;;  %4444 = vst [vmem:[#allocation32_spill] sm:$0xff] %v3410_v0  ;;  %v2059_v18 = vpop.eup %2058  ;;  %v932_v4 = vmul.f32 %v3088_v56, %v4455_v2  ;;  %v892_v57 = vsel %vm3434_vm1, %v4436_v12, %v888_v10  ;;  %v4460_v2 = vld [vmem:[#allocation125_spill] sm:$0xff]  ;;  %v4463_v12 = vld [vmem:[#allocation75_spill] sm:$0xff]  ;;  %vm964_vm1 = vweird.f32 %v4486_v8 }
 0x187   : > { %4442 = vst [vmem:[#allocation37_spill] sm:$0xff] %v3404_v46  ;;  %v2061_v11 = vpop.eup %2060  ;;  %v896_v46 = vor.u32 1.1754944e-38, %v895_v38  ;;  %v680_v30 = vmul.f32 0.6931472, %v2059_v18  ;;  %v4459_v38 = vld [vmem:[#allocation78_spill] sm:$0xff]  ;;  %vm934_vm6 = vweird.f32 %v4460_v2  ;;  %v3476_v10 = vadd.f32 %v670_v16, %v4463_v12 }
 0x188   : > { %2066 = vlog2.f32 %v4459_v38  ;;  %v2063_v63 = vpop.eup %2062  ;;  %v4464_v38 = vld [vmem:[#allocation76_spill] sm:$0xff]  ;;  %v3481_v43 = vmul.f32 0.6931472, %v2061_v11  ;;  %v933_v53 = vadd.f32 %v3088_v56, %v932_v4  ;;  %v940_v16 = vand.u32 2147483648, %v4460_v2  ;;  %vm3500_vm9 = vmor %vm934_vm6, %vm935_vm7 }
 0x189   : > { %2068 = vlog2.f32 %v4464_v38  ;;  %v3485_v32 = vpop.eup %2064  ;;  %v926_v12 = vor.u32 1.1754944e-38, %v925_v9  ;;  %v897_v38 = vsel %vm3459_vm5, %v896_v46, %v892_v57  ;;  %v922_v11 = vsel %vm3471_vm8, %v4441_v45, %v918_v1  ;;  %v4473_v9 = vld [vmem:[#allocation96_spill] sm:$0xff]  ;;  %v4475_v46 = vld [vmem:[#allocation51_spill] sm:$0xff] }
 0x18a   : > { %v3454_v47 = vpop.xlane.xlu0 %803  ;;  %4465 = vst [vmem:[#allocation122_spill] sm:$0xff] %v3481_v43  ;;  %v676_v4 = vmul.f32 0.6931472, %v2063_v63  ;;  %2070 = vlog2.f32 %v4475_v46  ;;  %v993_v57 = vadd.f32 %v4451_v5, %v992_v31  ;;  %v4476_v18 = vsub.f32 1.0, %v3192_v37  ;;  %v4478_v43 = vld [vmem:[#allocation21_spill] sm:$0xff] }
 0x18b   : > { %1349 = vperm.xlu2 %1815, %v4454_v23   ;;  %4456 = vst [vmem:[#allocation30_spill] sm:$0xff] %v3454_v47  ;;  %v923_v23 = vand.u32 2147483647, %v4453_v52  ;;  %v4468_v52 = vld [vmem:[#allocation93_spill] sm:$0xff]  ;;  %vm994_vm11 = vweird.f32 %v4478_v43  ;;  %v941_v31 = vor.u32 1.1754944e-38, %v940_v16  ;;  %v1000_v16 = vand.u32 2147483648, %v4478_v43 }
 0x18c   : > { %1432 = vperm.xlu1 %1817, %v2057_v26   ;;  %4467 = vst [vmem:[#allocation36_spill] sm:$0xff] %v3485_v32  ;;  %v3488_v49 = vadd.f32 %v684_v7, %v4468_v52  ;;  %v938_v7 = vand.u32 2147483647, %v4460_v2  ;;  %v3509_v52 = vadd.f32 %v680_v30, %v4473_v9  ;;  %v4477_v32 = vld [vmem:[#allocation38_spill] sm:$0xff]  ;;  %v4481_v9 = vld [vmem:[#allocation85_spill] sm:$0xff]  ;;  %vm3541_vm0 = vmor %vm994_vm11, %vm995_vm12  ;;  %vm1024_vm8 = vweird.f32 %v2964_v42 }
 0x18d   : > { %vm924_vm10 = vcmp.eq.f32.partialorder %v923_v23, 8.507059e+37  ;;  %v977_v2 = vmul.f32 %v4477_v32, %v4476_v18  ;;  %v937_v23 = vsel %vm3500_vm9, %v3088_v56, %v933_v53  ;;  %vm980_vm15 = vweird.f32 %v4477_v32  ;;  %v4485_v26 = vld [vmem:[#allocation40_spill] sm:$0xff] }
 0x18e   : > { %v3483_v47 = vpop.xlane.xlu2 %800  ;;  %4469 = vst [vmem:[#allocation29_spill] sm:$0xff] %v3488_v49  ;;  %v3492_v0 = vpop.xlane.xlu1 %797  ;;  %v3525_v30 = vsel %vm924_vm10, %v926_v12, %v922_v11  ;;  %vm3527_vm13 = vcmp.eq.f32.partialorder %v938_v7, 8.507059e+37  ;;  %v998_v18 = vand.u32 2147483647, %v4478_v43  ;;  %v3535_v46 = vadd.f32 %v676_v4, %v4481_v9  ;;  %v4488_v49 = vld [vmem:[#allocation34_spill] sm:$0xff]  ;;  %vm3558_vm3 = vmor %vm979_vm14, %vm980_vm15 }
 0x18f   : > { %4466 = vst [vmem:[#allocation84_spill] sm:$0xff] %v3483_v47  ;;  %v2067_v45 = vpop.eup %2066  ;;  %v4484_v12 = vsub.f32 1.0, %v3188_v22  ;;  %v978_v4 = vadd.f32 %v4477_v32, %v977_v2  ;;  %v985_v9 = vand.u32 2147483648, %v2934_v35  ;;  %v4487_v47 = vld [vmem:[#allocation33_spill] sm:$0xff]  ;;  %v983_v43 = vand.u32 2147483647, %v2934_v35 }
 0x190   : > { %4470 = vst [vmem:[#allocation86_spill] sm:$0xff] %v3492_v0  ;;  %v2069_v51 = vpop.eup %2068  ;;  %v686_v11 = vmul.f32 0.6931472, %v2067_v45  ;;  %vm965_vm4 = vweird.f32 %v4485_v26  ;;  %vm3569_vm5 = vcmp.eq.f32.partialorder %v998_v18, 8.507059e+37  ;;  %v1148_v37 = vsub.f32 %v3535_v46, %v3353_v39 }
 0x191   : > { %4474 = vst [vmem:[#allocation126_spill] sm:$0xff] %v3509_v52  ;;  %v962_v7 = vmul.f32 %v4485_v26, %v4484_v12  ;;  %v2071_v53 = vpop.eup %2070  ;;  %v690_v2 = vmul.f32 0.6931472, %v2069_v51  ;;  %v942_v12 = vsel %vm3527_vm13, %v941_v31, %v937_v23  ;;  %v1001_v52 = vor.u32 1.1754944e-38, %v1000_v16  ;;  %vm3583_vm6 = vmor %vm964_vm1, %vm965_vm4 }
 0x192   : > { %v813_v63 = vpop.xlane.xlu0 %812  ;;  %v682_v36 = vmul.f32 0.6931472, %v2071_v53  ;;  %v3576_v51 = vadd.f32 %v686_v11, %v4414_v19  ;;  %v982_v23 = vsel %vm3558_vm3, %v4477_v32, %v978_v4  ;;  %v986_v31 = vor.u32 1.1754944e-38, %v985_v9  ;;  %v4497_v32 = vld [vmem:[#allocation103_spill] sm:$0xff]  ;;  %v4498_v53 = vld [vmem:[#allocation132_spill] sm:$0xff] }
 0x193   : > { %v855_v0 = vsub.f32 %v4488_v49, %v813_v63  ;;  %v997_v49 = vsel %vm3541_vm0, %v4451_v5, %v993_v57  ;;  %v4493_v63 = vld [vmem:[#allocation25_spill] sm:$0xff]  ;;  %v963_v35 = vadd.f32 %v4485_v26, %v962_v7  ;;  %vm984_vm7 = vcmp.eq.f32.partialorder %v983_v43, 8.507059e+37  ;;  %v4501_v9 = vld [vmem:[#allocation131_spill] sm:$0xff] }
 0x194   : > { %v3595_v18 = vadd.f32 %v690_v2, %v4497_v32  ;;  %2072 = vlog2.f32 %v4498_v53  ;;  %v970_v16 = vand.u32 2147483648, %v4486_v8  ;;  %v968_v11 = vand.u32 2147483647, %v4486_v8  ;;  %v4504_v2 = vld [vmem:[#allocation127_spill] sm:$0xff]  ;;  %v4507_v8 = vld [vmem:[#allocation20_spill] sm:$0xff] }
 0x195   : > { %v913_v57 = vmul.f32 %v3313_v62, %v855_v0  ;;  %2074 = vlog2.f32 %v3232_v58  ;;  %v3611_v0 = vadd.f32 %v682_v36, %v4412_v40  ;;  %v987_v58 = vsel %vm984_vm7, %v986_v31, %v982_v23  ;;  %v4531_v23 = vld [vmem:[#allocation123_spill] sm:$0xff] }
 0x196   : > { %v810_v1 = vpop.xlane.xlu2 %809  ;;  %v807_v45 = vpop.xlane.xlu1 %806  ;;  %v4502_v22 = vsub.f32 1.0, %v4501_v9  ;;  %v971_v40 = vor.u32 1.1754944e-38, %v970_v16  ;;  %vm1039_vm9 = vweird.f32 %v4507_v8  ;;  %vm3633_vm11 = vcmp.eq.f32.partialorder %v968_v11, 8.507059e+37  ;;  %v4513_v16 = vld [vmem:[#allocation130_spill] sm:$0xff] }
 0x197   : > { %v854_v29 = vsub.f32 %v4487_v47, %v810_v1  ;;  %v853_v17 = vsub.f32 %v4493_v63, %v807_v45  ;;  %v4505_v45 = vsub.f32 1.0, %v4504_v2  ;;  %v1030_v31 = vand.u32 2147483648, %v2964_v42 }
 0x198   : > { %v1028_v53 = vand.u32 2147483647, %v2964_v42 }
 0x199   : > { %v898_v1 = vmul.f32 %v897_v38, %v854_v29  ;;  %v4496_v29 = vsub.f32 %v3394_v33, %v3265_v25  ;;  %v883_v19 = vmul.f32 %v3415_v55, %v853_v17  ;;  %v4499_v25 = vsub.f32 %v3319_v61, %v3244_v60 }
 0x19a   : > { %v822_v56 = vpop.xlane.xlu0 %821  ;;  %v3605_v17 = vsel %vm3569_vm5, %v1001_v52, %v997_v49  ;;  %v967_v33 = vsel %vm3583_vm6, %v4485_v26, %v963_v35  ;;  %v1153_v55 = vsub.f32 %v3576_v51, %v3408_v44  ;;  %v4500_v60 = vsub.f32 %v3302_v59, %v3246_v34  ;;  %v4503_v26 = vld [vmem:[#allocation44_spill] sm:$0xff]  ;;  %v4506_v49 = vld [vmem:[#allocation39_spill] sm:$0xff] }
 0x19b   : > { %v1158_v38 = vadd.f32 %v4496_v29, %v898_v1  ;;  %v1157_v62 = vadd.f32 %v4499_v25, %v883_v19  ;;  %v1022_v43 = vmul.f32 %v4503_v26, %v4502_v22  ;;  %v1037_v47 = vmul.f32 %v4506_v49, %v4505_v45  ;;  %v4508_v1 = vld [vmem:[#allocation128_spill] sm:$0xff]  ;;  %v4515_v25 = vld [vmem:[#allocation43_spill] sm:$0xff] }
 0x19c   : > { %v1159_v61 = vadd.f32 %v4500_v60, %v913_v57  ;;  %v858_v34 = vsub.f32 %v3282_v14, %v822_v56  ;;  %vm1025_vm10 = vweird.f32 %v4503_v26  ;;  %v1151_v35 = vsub.f32 %v3611_v0, %v3396_v28  ;;  %v4517_v22 = vld [vmem:[#allocation19_spill] sm:$0xff]  ;;  %v4571_v28 = vld [vmem:[#allocation136_spill] sm:$0xff] }
 0x19d   : > { %v1174_v52 = vadd.f32 %v1158_v38, %v1157_v62  ;;  %vm1040_vm12 = vweird.f32 %v4506_v49  ;;  %v1023_v38 = vadd.f32 %v4503_v26, %v1022_v43  ;;  %v1043_v57 = vand.u32 2147483647, %v4507_v8  ;;  %vm3644_vm13 = vmor %vm1024_vm8, %vm1025_vm10  ;;  %v4584_v44 = vld [vmem:[#allocation36_spill] sm:$0xff] }
 0x19e   : > { %v819_v7 = vpop.xlane.xlu2 %818  ;;  %v816_v36 = vpop.xlane.xlu1 %815  ;;  %v3650_v56 = vadd.f32 %v4506_v49, %v1037_v47  ;;  %v958_v11 = vmul.f32 %v3419_v50, %v858_v34  ;;  %v4516_v60 = vsub.f32 %v3368_v15, %v3258_v6  ;;  %v972_v42 = vsel %vm3633_vm11, %v971_v40, %v967_v33  ;;  %vm3677_vm0 = vmor %vm1039_vm9, %vm1040_vm12  ;;  %v4524_v34 = vld [vmem:[#allocation95_spill] sm:$0xff]  ;;  %v4548_v40 = vld [vmem:[#allocation37_spill] sm:$0xff] }
 0x19f   : > { %v857_v4 = vsub.f32 %v3260_v41, %v819_v7  ;;  %v1175_v59 = vadd.f32 %v1174_v52, %v1159_v61  ;;  %v856_v63 = vsub.f32 %v4508_v1, %v816_v36  ;;  %v2073_v41 = vpop.eup %2072  ;;  %v1031_v9 = vor.u32 1.1754944e-38, %v1030_v31  ;;  %v4545_v15 = vld [vmem:[#allocation79_spill] sm:$0xff] }
 0x1a0   : > { %v2075_v5 = vpop.eup %2074  ;;  %v3656_v7 = vmul.f32 0.6931472, %v2073_v41  ;;  %vm1009_vm14 = vweird.f32 %v4517_v22  ;;  %vm1010_vm15 = vweird.f32 %v4515_v25  ;;  %v4518_v43 = vsub.f32 %v3476_v10, %v3279_v21 }
 0x1a1   : > { %v943_v29 = vmul.f32 %v942_v12, %v857_v4  ;;  %v928_v14 = vmul.f32 %v3525_v30, %v856_v63  ;;  %v1045_v12 = vand.u32 2147483648, %v4507_v8  ;;  %v4514_v30 = vsub.f32 1.0, %v4513_v16  ;;  %vm3697_vm3 = vmor %vm1009_vm14, %vm1010_vm15 }
 0x1a2   : > { %v831_v19 = vpop.xlane.xlu0 %830  ;;  %v688_v52 = vmul.f32 0.6931472, %v2075_v5  ;;  %v1027_v6 = vsel %vm3644_vm13, %v4503_v26, %v1023_v38  ;;  %vm3681_vm1 = vcmp.eq.f32.partialorder %v1028_v53, 8.507059e+37  ;;  %v1015_v10 = vand.u32 2147483648, %v4517_v22  ;;  %v4532_v5 = vld [vmem:[#allocation106_spill] sm:$0xff] }
 0x1a3   : > { %v1007_v62 = vmul.f32 %v4515_v25, %v4514_v30  ;;  %v1160_v61 = vadd.f32 %v4516_v60, %v928_v14  ;;  %v1161_v36 = vadd.f32 %v4518_v43, %v943_v29  ;;  %v4523_v26 = vsub.f32 %v3337_v20, %v3267_v27  ;;  %v4529_v20 = vld [vmem:[#allocation134_spill] sm:$0xff]  ;;  %v4543_v43 = vld [vmem:[#allocation124_spill] sm:$0xff] }
 0x1a4   : > { %v861_v8 = vsub.f32 %v3330_v48, %v831_v19  ;;  %v1042_v63 = vsel %vm3677_vm0, %v4506_v49, %v3650_v56  ;;  %vm3705_vm4 = vcmp.eq.f32.partialorder %v1043_v57, 8.507059e+37  ;;  %v1046_v48 = vor.u32 1.1754944e-38, %v1045_v12  ;;  %v4533_v57 = vld [vmem:[#allocation129_spill] sm:$0xff]  ;;  %v4535_v12 = vld [vmem:[#allocation35_spill] sm:$0xff] }
 0x1a5   : > { %v1176_v2 = vadd.f32 %v1175_v59, %v1160_v61  ;;  %v1008_v21 = vadd.f32 %v4515_v25, %v1007_v62  ;;  %v1162_v45 = vadd.f32 %v4523_v26, %v958_v11  ;;  %v4530_v41 = vsub.f32 1.0, %v4529_v20  ;;  %v4563_v11 = vld [vmem:[#allocation135_spill] sm:$0xff] }
 0x1a6   : > { %v828_v4 = vpop.xlane.xlu2 %827  ;;  %v825_v33 = vpop.xlane.xlu1 %824  ;;  %v3713_v29 = vadd.f32 %v688_v52, %v4532_v5  ;;  %v1032_v32 = vsel %vm3681_vm1, %v1031_v9, %v1027_v6  ;;  %v4534_v56 = vsub.f32 1.0, %v4533_v57  ;;  %vm1084_vm5 = vweird.f32 %v2998_v24  ;;  %v4541_v9 = vld [vmem:[#allocation133_spill] sm:$0xff]  ;;  %v4544_v6 = vld [vmem:[#allocation28_spill] sm:$0xff]  ;;  %v4557_v57 = vld [vmem:[#allocation139_spill] sm:$0xff] }
 0x1a7   : > { %v860_v50 = vsub.f32 %v3324_v13, %v828_v4  ;;  %v1013_v13 = vand.u32 2147483647, %v4517_v22  ;;  %v1177_v47 = vadd.f32 %v1176_v2, %v1161_v36  ;;  %v859_v59 = vsub.f32 %v4524_v34, %v825_v33  ;;  %v4546_v33 = vld [vmem:[#allocation104_spill] sm:$0xff] }
 0x1a8   : > { %v1067_v31 = vmul.f32 %v4531_v23, %v4530_v41  ;;  %v1012_v49 = vsel %vm3697_vm3, %v4515_v25, %v1008_v21  ;;  %v1082_v16 = vmul.f32 %v4535_v12, %v4534_v56  ;;  %v1003_v30 = vmul.f32 %v3605_v17, %v861_v8 }
 0x1a9   : > { %v988_v14 = vmul.f32 %v987_v58, %v860_v50  ;;  %v1178_v38 = vadd.f32 %v1177_v47, %v1162_v45  ;;  %v973_v19 = vmul.f32 %v972_v42, %v859_v59  ;;  %v4536_v58 = vsub.f32 %v3443_v54, %v3286_v3  ;;  %v4539_v42 = vld [vmem:[#allocation27_spill] sm:$0xff]  ;;  %v4540_v54 = vld [vmem:[#allocation32_spill] sm:$0xff] }
 0x1aa   : > { %v840_v53 = vpop.xlane.xlu0 %839  ;;  %vm3728_vm6 = vcmp.eq.f32.partialorder %v1013_v13, 8.507059e+37  ;;  %v1016_v60 = vor.u32 1.1754944e-38, %v1015_v10  ;;  %v1068_v25 = vadd.f32 %v4531_v23, %v1067_v31  ;;  %vm1069_vm7 = vweird.f32 %v4539_v42  ;;  %v4549_v13 = vld [vmem:[#allocation137_spill] sm:$0xff] }
 0x1ab   : > { %v1163_v62 = vadd.f32 %v4536_v58, %v973_v19  ;;  %vm1070_vm8 = vweird.f32 %v4531_v23  ;;  %v1075_v52 = vand.u32 2147483648, %v4539_v42  ;;  %v1164_v17 = vadd.f32 %v1148_v37, %v988_v14  ;;  %v4587_v58 = vld [vmem:[#allocation46_spill] sm:$0xff] }
 0x1ac   : > { %v4542_v22 = vsub.f32 1.0, %v4541_v9  ;;  %v1073_v50 = vand.u32 2147483647, %v4539_v42  ;;  %vm1085_vm9 = vweird.f32 %v4535_v12  ;;  %vm1054_vm10 = vweird.f32 %v4544_v6  ;;  %vm3758_vm12 = vmor %vm1069_vm7, %vm1070_vm8  ;;  %v4569_v9 = vld [vmem:[#allocation24_spill] sm:$0xff] }
 0x1ad   : > { %v1179_v3 = vadd.f32 %v1178_v38, %v1163_v62  ;;  %vm1055_vm11 = vweird.f32 %v4543_v43  ;;  %v4547_v39 = vsub.f32 %v4545_v15, %v4546_v33  ;;  %v864_v21 = vsub.f32 %v4548_v40, %v840_v53  ;;  %vm3769_vm13 = vmor %vm1084_vm5, %vm1085_vm9 }
 0x1ae   : > { %v837_v61 = vpop.xlane.xlu2 %836  ;;  %v1052_v36 = vmul.f32 %v4543_v43, %v4542_v22  ;;  %v834_v2 = vpop.xlane.xlu1 %833  ;;  %v1017_v26 = vsel %vm3728_vm6, %v1016_v60, %v1012_v49  ;;  %v1083_v47 = vadd.f32 %v4535_v12, %v1082_v16  ;;  %v1058_v8 = vand.u32 2147483647, %v4544_v6  ;;  %vm3782_vm14 = vmor %vm1054_vm10, %vm1055_vm11  ;;  %v4556_v49 = vld [vmem:[#allocation126_spill] sm:$0xff]  ;;  %v4570_v22 = vld [vmem:[#allocation29_spill] sm:$0xff] }
 0x1af   : > { %v863_v4 = vsub.f32 %v4540_v54, %v837_v61  ;;  %v1165_v46 = vadd.f32 %v4547_v39, %v1003_v30  ;;  %v1180_v37 = vadd.f32 %v1179_v3, %v1164_v17  ;;  %v862_v10 = vsub.f32 %v4549_v13, %v834_v2  ;;  %v4565_v61 = vld [vmem:[#allocation77_spill] sm:$0xff]  ;;  %v4573_v2 = vld [vmem:[#allocation84_spill] sm:$0xff] }
 0x1b0   : > { %v1060_v34 = vand.u32 2147483648, %v4544_v6  ;;  %v1053_v31 = vadd.f32 %v4543_v43, %v1052_v36  ;;  %v1047_v5 = vsel %vm3705_vm4, %v1046_v48, %v1042_v63  ;;  %v1076_v14 = vor.u32 1.1754944e-38, %v1075_v52  ;;  %v4566_v52 = vld [vmem:[#allocation86_spill] sm:$0xff]  ;;  %v4574_v6 = vld [vmem:[#allocation140_spill] sm:$0xff] }
 0x1b1   : > { %v1033_v59 = vmul.f32 %v1032_v32, %v863_v4  ;;  %v1181_v1 = vadd.f32 %v1180_v37, %v1165_v46  ;;  %v1018_v20 = vmul.f32 %v1017_v26, %v862_v10  ;;  %v1088_v38 = vand.u32 2147483647, %v2998_v24  ;;  %v4575_v10 = vld [vmem:[#allocation138_spill] sm:$0xff]  ;;  %v4583_v32 = vld [vmem:[#allocation112_spill] sm:$0xff] }
 0x1b2   : > { %v1090_v19 = vand.u32 2147483648, %v2998_v24  ;;  %v1048_v53 = vmul.f32 %v1047_v5, %v864_v21  ;;  %v4558_v56 = vsub.f32 %v4556_v49, %v4557_v57  ;;  %v1072_v63 = vsel %vm3758_vm12, %v4531_v23, %v1068_v25  ;;  %v849_v30 = vpop.xlane.xlu0 %848  ;;  %v4581_v5 = vld [vmem:[#allocation45_spill] sm:$0xff] }
 0x1b3   : > { %vm3792_vm15 = vcmp.eq.f32.partialorder %v1073_v50, 8.507059e+37  ;;  %v1087_v48 = vsel %vm3769_vm13, %v4535_v12, %v1083_v47  ;;  %vm3799_vm0 = vcmp.eq.f32.partialorder %v1058_v8, 8.507059e+37  ;;  %v1061_v62 = vor.u32 1.1754944e-38, %v1060_v34  ;;  %v4578_v8 = vld [vmem:[#allocation42_spill] sm:$0xff]  ;;  %v4579_v34 = vld [vmem:[#allocation52_spill] sm:$0xff]  ;;  %v4597_v47 = vld [vmem:[#allocation23_spill] sm:$0xff] }
 0x1b4   : > { %v1166_v16 = vadd.f32 %v4558_v56, %v1018_v20  ;;  %v4564_v60 = vsub.f32 1.0, %v4563_v11  ;;  %v1167_v23 = vadd.f32 %v1151_v35, %v1033_v59  ;;  %v1057_v12 = vsel %vm3782_vm14, %v4543_v43, %v1053_v31 }
 0x1b5   : > { %vm3813_vm1 = vcmp.eq.f32.partialorder %v1088_v38, 8.507059e+37  ;;  %v1091_v54 = vor.u32 1.1754944e-38, %v1090_v19  ;;  %vm1099_vm3 = vweird.f32 %v4569_v9  ;;  %vm1100_vm4 = vweird.f32 %v4565_v61 }
 0x1b6   : > { %v846_v24 = vpop.xlane.xlu2 %845  ;;  %v1097_v42 = vmul.f32 %v4565_v61, %v4564_v60  ;;  %v1182_v25 = vadd.f32 %v1181_v1, %v1166_v16  ;;  %v843_v4 = vpop.xlane.xlu1 %842  ;;  %v4572_v0 = vsub.f32 %v4570_v22, %v4571_v28  ;;  %v867_v50 = vsub.f32 %v4573_v2, %v849_v30  ;;  %vm3838_vm5 = vmor %vm1099_vm3, %vm1100_vm4  ;;  %v4580_v1 = vld [vmem:[#allocation122_spill] sm:$0xff]  ;;  %v4591_v22 = vld [vmem:[#allocation47_spill] sm:$0xff] }
 0x1b7   : > { %v866_v17 = vsub.f32 %v4566_v52, %v846_v24  ;;  %v865_v15 = vsub.f32 %v4574_v6, %v843_v4  ;;  %v1077_v43 = vsel %vm3792_vm15, %v1076_v14, %v1072_v63  ;;  %v1062_v33 = vsel %vm3799_vm0, %v1061_v62, %v1057_v12  ;;  %v4582_v14 = vld [vmem:[#allocation41_spill] sm:$0xff]  ;;  %v4585_v24 = vld [vmem:[#allocation30_spill] sm:$0xff] }
 0x1b8   : > { %v1168_v35 = vadd.f32 %v4572_v0, %v1048_v53  ;;  %v1183_v36 = vadd.f32 %v1182_v25, %v1167_v23  ;;  %v1103_v39 = vand.u32 2147483647, %v4569_v9  ;;  %v1105_v46 = vand.u32 2147483648, %v4569_v9  ;;  %v4588_v25 = vld [vmem:[#allocation49_spill] sm:$0xff]  ;;  %v4590_v4 = vld [vmem:[#allocation58_spill] sm:$0xff] }
 0x1b9   : > { %v1078_v37 = vmul.f32 %v1077_v43, %v866_v17  ;;  %v1063_v21 = vmul.f32 %v1062_v33, %v865_v15  ;;  %v1098_v13 = vadd.f32 %v4565_v61, %v1097_v42  ;;  %v1138_v26 = vmul.f32 0.6931472, %v4575_v10  ;;  %v4594_v33 = vld [vmem:[#allocation55_spill] sm:$0xff] }
 0x1ba   : > { %v1184_v40 = vadd.f32 %v1183_v36, %v1168_v35  ;;  %v1092_v45 = vsel %vm3813_vm1, %v1091_v54, %v1087_v48  ;;  %v1572_v59 = vadd.f32 %v4579_v34, %v4578_v8  ;;  %v1154_v20 = vsub.f32 %v3713_v29, %v4580_v1  ;;  %v4592_v36 = vld [vmem:[#allocation54_spill] sm:$0xff] }
 0x1bb   : > { %v1093_v41 = vmul.f32 %v1092_v45, %v867_v50  ;;  %v1169_v31 = vadd.f32 %v1153_v55, %v1063_v21  ;;  %v1552_v38 = vadd.f32 %v4582_v14, %v4581_v5  ;;  %v1155_v19 = vsub.f32 %v3595_v18, %v1138_v26  ;;  %v4586_v18 = vld [vmem:[#allocation48_spill] sm:$0xff]  ;;  %v4593_v50 = vld [vmem:[#allocation50_spill] sm:$0xff]  ;;  %v4596_v26 = vld [vmem:[#allocation17_spill] sm:$0xff] }
 0x1bc   : > { %v708_v53 = vadd.f32 %v3656_v7, %v4583_v32  ;;  %v1106_v57 = vor.u32 1.1754944e-38, %v1105_v46  ;;  %v1170_v56 = vadd.f32 %v1154_v20, %v1078_v37  ;;  %v1102_v29 = vsel %vm3838_vm5, %v4565_v61, %v1098_v13  ;;  %v4589_v61 = vld [vmem:[#allocation57_spill] sm:$0xff]  ;;  %v4595_v46 = vld [vmem:[#allocation63_spill] sm:$0xff]  ;;  %v4599_v20 = vld [vmem:[#allocation94_spill] sm:$0xff] }
 0x1bd   : > { %v1185_v16 = vadd.f32 %v1184_v40, %v1169_v31  ;;  %vm1104_vm6 = vcmp.eq.f32.partialorder %v1103_v39, 8.507059e+37  ;;  %v1140_v51 = vmul.f32 0.6931472, %v4584_v44  ;;  %v1171_v55 = vadd.f32 %v1155_v19, %v1093_v41  ;;  %v1173_v40 = vld [vmem:[#allocation7] sm:$0x1]  ;;  %v4601_v14 = vld [vmem:[#allocation53_spill] sm:$0xff] }
 0x1be   : > { %v1275_v49 = vpop.permute.xlu2 %1274  ;;  %v852_v63 = vpop.xlane.xlu1 %851  ;;  %v1553_v30 = vadd.f32 %v1552_v38, %v4586_v18  ;;  %v1573_v7 = vadd.f32 %v1572_v59, %v4587_v58  ;;  %v1107_v62 = vsel %vm1104_vm6, %v1106_v57, %v1102_v29  ;;  %v1487_v45 = vrot.slane %v4596_v26, 4  ;;  %v4598_v59 = vld [vmem:[#allocation91_spill] sm:$0xff]  ;;  %v4600_v31 = vld [vmem:[#allocation64_spill] sm:$0xff]  ;;  %v4602_v19 = vld [vmem:[#allocation22_spill] sm:$0xff] }
 0x1bf   : > { %v1186_v27 = vadd.f32 %v1185_v16, %v1170_v56  ;;  %v868_v48 = vsub.f32 %v4585_v24, %v852_v63  ;;  %v1156_v11 = vsub.f32 %v708_v53, %v1140_v51  ;;  %v1537_v8 = vrot.slane %v4597_v47, 4  ;;  %v4603_v53 = vld [vmem:[#allocation82_spill] sm:$0xff]  ;;  %v4604_v56 = vld [vmem:[#allocation83_spill] sm:$0xff] }
 0x1c0   : > { %v1574_v52 = vadd.f32 %v1573_v7, %v4588_v25  ;;  %v1554_v17 = vadd.f32 %v1553_v30, %v4589_v61  ;;  %v1466_v32 = vrot.slane %v4602_v19, 4  ;;  %v1352_v57 = vmul.f32 %v4603_v53, %v1275_v49  ;;  %v4605_v63 = vld [vmem:[#allocation26_spill] sm:$0xff]  ;;  %v4607_v30 = vld [vmem:[#allocation81_spill] sm:$0xff]  ;;  %v4608_v7 = vld [vmem:[#allocation60_spill] sm:$0xff] }
 0x1c1   : > { %v1187_v60 = vadd.f32 %v1186_v27, %v1171_v55  ;;  %v1108_v42 = vmul.f32 %v1107_v62, %v868_v48  ;;  %v1353_v16 = vmul.f32 %v4604_v56, %v1275_v49  ;;  %v1488_v29 = vadd.f32 %v1487_v45, %v4596_v26  ;;  %v4606_v48 = vld [vmem:[#allocation80_spill] sm:$0xff] }
 0x1c2   : > { %v1575_v9 = vadd.f32 %v1574_v52, %v4590_v4  ;;  %v1555_v28 = vadd.f32 %v1554_v17, %v4591_v22  ;;  %v1516_v44 = vrot.slane %v4605_v63, 4  ;;  %v1538_v51 = vadd.f32 %v1537_v8, %v4597_v47  ;;  %v4611_v4 = vld [vmem:[#allocation90_spill] sm:$0xff]  ;;  %v4612_v22 = vld [vmem:[#allocation61_spill] sm:$0xff]  ;;  %v4617_v26 = vld [vmem:[#allocation88_spill] sm:$0xff] }
 0x1c3   : > { %v1172_v23 = vadd.f32 %v1156_v11, %v1108_v42  ;;  %v4609_v11 = vld [vmem:[#allocation56_spill] sm:$0xff]  ;;  %v1467_v49 = vadd.f32 %v1466_v32, %v4602_v19  ;;  %v1489_v25 = vrot.slane %v1488_v29, 2  ;;  %v4619_v8 = vld [vmem:[#allocation59_spill] sm:$0xff]  ;;  %v4620_v32 = vld [vmem:[#allocation66_spill] sm:$0xff]  ;;  %vm1440_vm7 = vcmask 1040384  }
 0x1c4   : > { %v1556_v2 = vadd.f32 %v1555_v28, %v4592_v36  ;;  %v1576_v6 = vadd.f32 %v1575_v9, %v4593_v50  ;;  %v1517_v52 = vadd.f32 %v1516_v44, %v4605_v63  ;;  %v1539_v61 = vrot.slane %v1538_v51, 2  ;;  %v4623_v44 = vld [vmem:[#allocation101_spill] sm:$0xff] }
 0x1c5   : > { %v1188_v12 = vadd.f32 %v1187_v60, %v1172_v23  ;;  %v1280_v21 = vpop.permute.xlu0 %1279  ;;  %v1468_v36 = vrot.slane %v1467_v49, 2 }
 0x1c6   : > { %v1290_v3 = vpop.permute.xlu2 %1289  ;;  %v1577_v39 = vadd.f32 %v1576_v6, %v4594_v33  ;;  %v1557_v37 = vadd.f32 %v1556_v2, %v4595_v46  ;;  %v1354_v1 = vmul.f32 %v4598_v59, %v1280_v21  ;;  %v1355_v41 = vmul.f32 %v4599_v20, %v1280_v21  ;;  %v4616_v21 = vld [vmem:[#allocation87_spill] sm:$0xff] }
 0x1c7   : > { %v1189_v54 = vrot.slane %v1188_v12, 4  ;;  %v1359_v9 = vmul.f32 %v4611_v4, %v1290_v3  ;;  %v1490_v6 = vadd.f32 %v1489_v25, %v1488_v29  ;;  %v1469_v59 = vadd.f32 %v1468_v36, %v1467_v49  ;;  %v4622_v29 = vld [vmem:[#allocation100_spill] sm:$0xff]  ;;  %v4631_v36 = vld [vmem:[#allocation110_spill] sm:$0xff] }
 0x1c8   : > { %v1578_v5 = vadd.f32 %v1577_v39, %v4600_v31  ;;  %v1558_v38 = vadd.f32 %v1557_v37, %v4601_v14  ;;  %v1384_v27 = vadd.f32 %v1354_v1, %v1352_v57  ;;  %v1405_v24 = vadd.f32 %v1355_v41, %v1353_v16  ;;  %v4614_v39 = vld [vmem:[#allocation92_spill] sm:$0xff]  ;;  %v4615_v37 = vld [vmem:[#allocation97_spill] sm:$0xff] }
 0x1c9   : > { %v1190_v0 = vadd.f32 %v1189_v54, %v1188_v12  ;;  %v4610_v12 = vld [vmem:[#allocation89_spill] sm:$0xff]  ;;  %v1491_v41 = vrot.slane %v1490_v6, 1  ;;  %v1470_v56 = vrot.slane %v1469_v59, 1 }
 0x1ca   : > { %v1559_v62 = vadd.f32 %v1558_v38, %v4608_v7  ;;  %v1579_v60 = vadd.f32 %v1578_v5, %v4609_v11  ;;  %v1358_v54 = vmul.f32 %v4610_v12, %v1290_v3  ;;  %v4618_v3 = vld [vmem:[#allocation70_spill] sm:$0xff]  ;;  %v4629_v12 = vld [vmem:[#allocation99_spill] sm:$0xff] }
 0x1cb   : > { %v1191_v35 = vrot.slane %v1190_v0, 2  ;;  %v1471_v25 = vadd.f32 %v1470_v56, %v1469_v59 }
 0x1cc   : > { %v1580_v28 = vadd.f32 %v1579_v60, %v4612_v22  ;;  %v4626_v60 = vld [vmem:[#allocation67_spill] sm:$0xff] }
 0x1cd   : > { %v1192_v15 = vadd.f32 %v1191_v35, %v1190_v0  ;;  %v4613_v0 = vld [vmem:[#allocation69_spill] sm:$0xff]  ;;  %v1315_v14 = vpop.permute.xlu0 %1314 }
 0x1ce   : > { %v1295_v13 = vpop.permute.xlu2 %1294  ;;  %v1560_v35 = vadd.f32 %v1559_v62, %v4613_v0  ;;  %v1581_v47 = vadd.f32 %v1580_v28, %v4618_v3  ;;  %v4625_v62 = vld [vmem:[#allocation105_spill] sm:$0xff] }
 0x1cf   : > { %v1193_v43 = vrot.slane %v1192_v15, 1  ;;  %v1360_v46 = vmul.f32 %v4614_v39, %v1295_v13  ;;  %v4630_v0 = vld [vmem:[#allocation109_spill] sm:$0xff] }
 0x1d1   : > { %v1194_v10 = vadd.f32 %v1193_v43, %v1192_v15  ;;  %v1518_v15 = vrot.slane %v1517_v52, 2  ;;  %v1540_v43 = vadd.f32 %v1539_v61, %v1538_v51 }
 0x1d3   : > { %v1195_v34 = vadd.f32 %v1194_v10, %v1173_v40  ;;  %v1361_v40 = vmul.f32 %v4615_v37, %v1295_v13  ;;  %v1519_v31 = vadd.f32 %v1518_v15, %v1517_v52  ;;  %v1541_v5 = vrot.slane %v1540_v43, 1  ;;  %v4621_v13 = vld [vmem:[#allocation62_spill] sm:$0xff]  ;;  %v4632_v15 = vld [vmem:[#allocation72_spill] sm:$0xff]  ;;  %v1450_v37 = vld [vmem:[#allocation3] sm:$0x3] }
 0x1d4   : > { %v1582_v57 = vadd.f32 %v1581_v47, %v4621_v13  ;;  %v4628_v52 = vld [vmem:[#allocation98_spill] sm:$0xff]  ;;  %v4633_v47 = vld [vmem:[#allocation65_spill] sm:$0xff] }
 0x1d5   : > { %1197 = vst.msk [vmem:[#allocation7] sm:$0x1] %vm1196_vm2, %v1195_v34  ;;  %v1561_v34 = vadd.f32 %v1560_v35, %v4619_v8  ;;  %v1368_v61 = vmul.f32 %v4628_v52, %v1315_v14 }
 0x1d6   : > { %v1285_v55 = vpop.permute.xlu1 %1284  ;;  %v1305_v17 = vpop.permute.xlu2 %1304  ;;  %v1583_v49 = vadd.f32 %v1582_v57, %v4626_v60  ;;  %v4641_v57 = vld [vmem:[#allocation108_spill] sm:$0xff] }
 0x1d7   : > { %v1356_v18 = vmul.f32 %v4606_v48, %v1285_v55  ;;  %v1357_v58 = vmul.f32 %v4607_v30, %v1285_v55  ;;  %v1562_v53 = vadd.f32 %v1561_v34, %v4620_v32  ;;  %v1364_v63 = vmul.f32 %v4622_v29, %v1305_v17  ;;  %v4634_v34 = vld [vmem:[#allocation111_spill] sm:$0xff] }
 0x1d8   : > { %v1365_v51 = vmul.f32 %v4623_v44, %v1305_v17  ;;  %v1492_v55 = vadd.f32 %v1491_v41, %v1490_v6  ;;  %v4642_v44 = vld [vmem:[#allocation74_spill] sm:$0xff] }
 0x1d9   : > { %v1385_v42 = vadd.f32 %v1384_v27, %v1356_v18  ;;  %v1406_v23 = vadd.f32 %v1405_v24, %v1357_v58  ;;  %v1520_v27 = vrot.slane %v1519_v31, 1  ;;  %v1542_v24 = vadd.f32 %v1541_v5, %v1540_v43  ;;  %v4624_v58 = vld [vmem:[#allocation102_spill] sm:$0xff] }
 0x1da   : > { %v1584_v43 = vadd.f32 %v1583_v49, %v4632_v15 }
 0x1db   : > { %v1386_v2 = vadd.f32 %v1385_v42, %v1358_v54  ;;  %v1407_v50 = vadd.f32 %v1406_v23, %v1359_v9  ;;  %v4627_v42 = vld [vmem:[#allocation71_spill] sm:$0xff]  ;;  %v1369_v54 = vmul.f32 %v4629_v12, %v1315_v14  ;;  %v1495_v9 = vrot.slane %v1492_v55, 7  ;;  %v4638_v14 = vld [vmem:[#allocation73_spill] sm:$0xff] }
 0x1dc   : > { %v1563_v23 = vadd.f32 %v1562_v53, %v4627_v42  ;;  %v1521_v22 = vadd.f32 %v1520_v27, %v1519_v31  ;;  %v1545_v28 = vrot.slane %v1542_v24, 7  ;;  %v4640_v53 = vld [vmem:[#allocation107_spill] sm:$0xff] }
 0x1dd   : > { %v1387_v1 = vadd.f32 %v1386_v2, %v1360_v46  ;;  %v1408_v20 = vadd.f32 %v1407_v50, %v1361_v40  ;;  %v1500_v40 = vld [vmem:[#allocation4] sm:$0x3] }
 0x1de   : > { %v1300_v33 = vpop.permute.xlu1 %1299  ;;  %v1320_v16 = vpop.permute.xlu2 %1319  ;;  %v1546_v3 = vsel %vm1440_vm7, %v1521_v22, %v1545_v28  ;;  %v1564_v8 = vadd.f32 %v1563_v23, %v4633_v47  ;;  %v4648_v28 = vld [vmem:[#allocation115_spill] sm:$0xff]  ;;  %v1550_v47 = vld [vmem:[#allocation5] sm:$0x3] }
 0x1df   : > { %v1362_v10 = vmul.f32 %v4616_v21, %v1300_v33  ;;  %v1363_v45 = vmul.f32 %v4617_v26, %v1300_v33  ;;  %v1370_v35 = vmul.f32 %v4630_v0, %v1320_v16  ;;  %v1371_v2 = vmul.f32 %v4631_v36, %v1320_v16  ;;  %v1330_v33 = vpop.permute.xlu0 %1329 }
 0x1e0   : > { %v1444_v26 = vlaneseq  ;;  %v1548_v31 = vadd.f32 %v1546_v3, %v1500_v40  ;;  %v1374_v13 = vmul.f32 %v4640_v53, %v1330_v33  ;;  %v1375_v56 = vmul.f32 %v4641_v57, %v1330_v33 }
 0x1e1   : > { %v1388_v38 = vadd.f32 %v1387_v1, %v1362_v10  ;;  %v1409_v19 = vadd.f32 %v1408_v20, %v1363_v45  ;;  %v1496_v45 = vsel %vm1440_vm7, %v1471_v25, %v1495_v9  ;;  %v4635_v1 = vld [vmem:[#allocation113_spill] sm:$0xff]  ;;  %v4645_v25 = vld [vmem:[#allocation118_spill] sm:$0xff] }
 0x1e2   : > { %v1498_v41 = vadd.f32 %v1496_v45, %v1450_v37  ;;  %vm3916_vm8 = vcmp.lt.s32.totalorder %v1444_v26, 256  ;;  %v4647_v9 = vld [vmem:[#allocation114_spill] sm:$0xff] }
 0x1e3   : > { %v1389_v18 = vadd.f32 %v1388_v38, %v1364_v63  ;;  %v1410_v30 = vadd.f32 %v1409_v19, %v1365_v51  ;;  %v1565_v38 = vadd.f32 %v1564_v8, %v4638_v14  ;;  %v4639_v19 = vld [vmem:[#allocation68_spill] sm:$0xff]  ;;  %1549 = vst.msk [vmem:[#allocation4] sm:$0x3] %vm3916_vm8, %v1548_v31 }
 0x1e4   : > { %v1585_v32 = vadd.f32 %v1584_v43, %v4639_v19  ;;  %1499 = vst.msk [vmem:[#allocation3] sm:$0x3] %vm3916_vm8, %v1498_v41  ;;  %v4650_v43 = vld [vmem:[#allocation121_spill] sm:$0xff] }
 0x1e5   : > { %v1566_v63 = vrot.slane %v1565_v38, 4 }
 0x1e6   : > { %v1310_v48 = vpop.permute.xlu1 %1309  ;;  %v1335_v21 = vpop.permute.xlu2 %1334  ;;  %v1586_v51 = vadd.f32 %v1585_v32, %v4642_v44 }
 0x1e7   : > { %v1366_v7 = vmul.f32 %v4624_v58, %v1310_v48  ;;  %v1367_v11 = vmul.f32 %v4625_v62, %v1310_v48  ;;  %v1567_v24 = vadd.f32 %v1566_v63, %v1565_v38  ;;  %v4644_v58 = vld [vmem:[#allocation117_spill] sm:$0xff]  ;;  %v1345_v62 = vpop.permute.xlu0 %1344 }
 0x1e8   : > { %v1587_v48 = vrot.slane %v1586_v51, 4  ;;  %v1380_v22 = vmul.f32 %v4647_v9, %v1345_v62  ;;  %v1381_v0 = vmul.f32 %v4648_v28, %v1345_v62 }
 0x1e9   : > { %v1390_v17 = vadd.f32 %v1389_v18, %v1366_v7  ;;  %v1411_v4 = vadd.f32 %v1410_v30, %v1367_v11  ;;  %v4643_v18 = vld [vmem:[#allocation116_spill] sm:$0xff]  ;;  %v1377_v7 = vmul.f32 %v4644_v58, %v1335_v21  ;;  %v1568_v60 = vrot.slane %v1567_v24, 2 }
 0x1ea   : > { %v1376_v30 = vmul.f32 %v4643_v18, %v1335_v21  ;;  %v1588_v49 = vadd.f32 %v1587_v48, %v1586_v51 }
 0x1eb   : > { %v1391_v50 = vadd.f32 %v1390_v17, %v1368_v61  ;;  %v1412_v6 = vadd.f32 %v1411_v4, %v1369_v54  ;;  %v4646_v61 = vld [vmem:[#allocation119_spill] sm:$0xff]  ;;  %v1569_v17 = vadd.f32 %v1568_v60, %v1567_v24 }
 0x1ec   : > { %v1589_v4 = vrot.slane %v1588_v49, 2 }
 0x1ed   : > { %v1392_v39 = vadd.f32 %v1391_v50, %v1370_v35  ;;  %v1413_v46 = vadd.f32 %v1412_v6, %v1371_v2  ;;  %v1570_v2 = vrot.slane %v1569_v17, 1  ;;  %v4649_v6 = vld [vmem:[#allocation120_spill] sm:$0xff] }
 0x1ee   : > { %v1325_v10 = vpop.permute.xlu1 %1324  ;;  %v1350_v54 = vpop.permute.xlu2 %1349  ;;  %v1590_v50 = vadd.f32 %v1589_v4, %v1588_v49 }
 0x1ef   : > { %v1372_v59 = vmul.f32 %v4634_v34, %v1325_v10  ;;  %v1373_v20 = vmul.f32 %v4635_v1, %v1325_v10  ;;  %v1382_v15 = vmul.f32 %v4649_v6, %v1350_v54  ;;  %v1383_v33 = vmul.f32 %v4650_v43, %v1350_v54 }
 0x1f0   : > { %v1591_v37 = vrot.slane %v1590_v50, 1  ;;  %v1571_v10 = vadd.f32 %v1570_v2, %v1569_v17 }
 0x1f1   : > { %v1393_v16 = vadd.f32 %v1392_v39, %v1372_v59  ;;  %v1414_v29 = vadd.f32 %v1413_v46, %v1373_v20 }
 0x1f2   : > { %v1592_v26 = vadd.f32 %v1591_v37, %v1590_v50 }
 0x1f3   : > { %v1394_v55 = vadd.f32 %v1393_v16, %v1374_v13  ;;  %v1415_v27 = vadd.f32 %v1414_v29, %v1375_v56  ;;  %v1426_v56 = vld [vmem:[#allocation2] sm:$0x3] }
 0x1f4   : > { %v1595_v8 = vrot.slane %v1592_v26, 7 }
 0x1f5   : > { %v1395_v42 = vadd.f32 %v1394_v55, %v1376_v30  ;;  %v1416_v23 = vadd.f32 %v1415_v27, %v1377_v7 }
 0x1f6   : > { %v1340_v11 = vpop.permute.xlu1 %1339  ;;  %v1596_v1 = vsel %vm1440_vm7, %v1571_v10, %v1595_v8 }
 0x1f7   : > { %v1378_v52 = vmul.f32 %v4645_v25, %v1340_v11  ;;  %v1379_v12 = vmul.f32 %v4646_v61, %v1340_v11  ;;  %v1598_v31 = vadd.f32 %v1596_v1, %v1550_v47 }
 0x1f9   : > { %v1396_v35 = vadd.f32 %v1395_v42, %v1378_v52  ;;  %v1417_v36 = vadd.f32 %v1416_v23, %v1379_v12  ;;  %1599 = vst.msk [vmem:[#allocation5] sm:$0x3] %vm3916_vm8, %v1598_v31 }
 0x1fb   : > { %v1397_v39 = vadd.f32 %v1396_v35, %v1380_v22  ;;  %v1418_v46 = vadd.f32 %v1417_v36, %v1381_v0 }
 0x1fd   : > { %v1398_v40 = vadd.f32 %v1397_v39, %v1382_v15  ;;  %v1419_v21 = vadd.f32 %v1418_v46, %v1383_v33 }
 0x1fe   : > { %v1433_v19 = vpop.permute.xlu1 %1432 }
 0x1ff   : > { %v1399_v45 = vrot.slane %v1398_v40, 4  ;;  %v1420_v3 = vrot.slane %v1419_v21, 4  ;;  %v1435_v13 = vperm.slane %v1433_v19, 0 }
 0x201   : > { %v1400_v34 = vadd.f32 %v1399_v45, %v1398_v40  ;;  %v1421_v59 = vadd.f32 %v1420_v3, %v1419_v21  ;;  %v1436_v63 = vmul.f32 %v1435_v13, %v1426_v56 }
 0x203   : > { %v1401_v20 = vrot.slane %v1400_v34, 2  ;;  %v1422_v41 = vrot.slane %v1421_v59, 2 }
 0x205   : > { %v1402_v14 = vadd.f32 %v1401_v20, %v1400_v34  ;;  %v1423_v38 = vadd.f32 %v1422_v41, %v1421_v59 }
 0x207   : > { %v1403_v32 = vrot.slane %v1402_v14, 1  ;;  %v1424_v53 = vrot.slane %v1423_v38, 1 }
 0x209   : > { %v1425_v57 = vadd.f32 %v1424_v53, %v1423_v38  ;;  %v1404_v16 = vadd.f32 %v1403_v32, %v1402_v14 }
 0x20b   : > { %v1439_v29 = vrot.slane %v1425_v57, 7 }
 0x20c   : > { %1603 = sbr.rel (%p1749_p7) target bundleno = 780 (0x30c), region = 44 }
 0x20d   : > { %v1441_v44 = vsel %vm1440_vm7, %v1404_v16, %v1439_v29 }
 0x20e   : > { %v1443_v51 = vadd.f32 %v1441_v44, %v1436_v63 }
 0x210   : > { %1448 = vst.msk [vmem:[#allocation2] sm:$0x3] %vm3916_vm8, %v1443_v51 }
 0x211   : > { %v1605_v55 = vld [vmem:[#allocation6] sm:$0x1]  ;;  %v2220_v27 = vmov 0   ;;  %v1604_v24 = vld [vmem:[#allocation5] sm:$0x3] }
 0x212   : > { %2076 = vset.pattern.permute.xlu0 %v2220_v27  ;;  %2077 = vrcp.f32 %v1604_v24  ;;  %vm1624_vm9 = vweird.f32 %v1604_v24  ;;  %v1630_v5 = vand.u32 2147483648, %v1604_v24  ;;  %v1628_v11 = vand.u32 2147483647, %v1604_v24  ;;  %v1616_v49 = vld [vmem:[#allocation3] sm:$0x3] }
 0x213   : > { %1611 = vperm.xlu0 %2076, %v1605_v55   ;;  %v1617_v42 = vld [vmem:[#allocation4] sm:$0x3]  ;;  %v1648_v43 = vld [vmem:[#allocation7] sm:$0x1] }
 0x214   : > { %v1631_v23 = vor.u32 1.1754944e-38, %v1630_v5  ;;  %vm1629_vm12 = vcmp.eq.f32.partialorder %v1628_v11, 8.507059e+37  ;;  %v1618_v12 = vsub.f32 %v1616_v49, %v1617_v42 }
 0x217   : > { %v1606_v58 = vld [vmem:[#allocation2] sm:$0x3] }
 0x218   : > { %v2078_v48 = vpop.eup %2077  ;;  %2079 = vlog2.f32 %v1606_v58 }
 0x219   : > { %v1620_v18 = vmul.f32 %v2078_v48, %v1604_v24  ;;  %vm1625_vm10 = vweird.f32 %v2078_v48  ;;  %2081 = vlog2.f32 %v1604_v24 }
 0x21a   : > { %vm1626_vm11 = vmor %vm1624_vm9, %vm1625_vm10 }
 0x21b   : > { %v1621_v30 = vsub.f32 1.0, %v1620_v18 }
 0x21d   : > { %v1622_v7 = vmul.f32 %v2078_v48, %v1621_v30 }
 0x21e   : > { %v2080_v60 = vpop.eup %2079 }
 0x21f   : > { %v1623_v62 = vadd.f32 %v2078_v48, %v1622_v7  ;;  %v2082_v52 = vpop.eup %2081  ;;  %v1608_v61 = vmul.f32 0.6931472, %v2080_v60 }
 0x220   : > { %v1635_v9 = vmul.f32 0.6931472, %v2082_v52 }
 0x221   : > { %v1627_v25 = vsel %vm1626_vm11, %v2078_v48, %v1623_v62 }
 0x222   : > { %v1632_v17 = vsel %vm1629_vm12, %v1631_v23, %v1627_v25 }
 0x223   : > { %v1633_v28 = vmul.f32 %v1632_v17, %v1618_v12 }
 0x285   : > { %v1612_v54 = vpop.permute.xlu0 %1611 }
 0x286   : > { %v1614_v4 = vperm.slane %v1612_v54, 0 }
 0x288   : > { %v1615_v22 = vadd.f32 %v1614_v4, %v1608_v61 }
 0x28a   : > { %v1636_v0 = vsub.f32 %v1615_v22, %v1635_v9 }
 0x28c   : > { %v1637_v35 = vadd.f32 %v1636_v0, %v1633_v28 }
 0x28e   : > { %v1639_v36 = vperm.slane %v1637_v35, 0  ;;  %v1640_v2 = vperm.slane %v1637_v35, 1 }
 0x290   : > { %v1643_v50 = vsel %vm1440_vm7, %v1639_v36, 0.0  ;;  %v1644_v6 = vsel %vm1440_vm7, %v1640_v2, 0.0 }
 0x291   : > { %v1645_v15 = vadd.f32 %v1644_v6, %v1643_v50 }
 0x293   : > { %1646 = vadd.xlane.f32.xlu0 %v1645_v15 }
 0x306   : > { %v1647_v33 = vpop.xlane.xlu0 %1646 }
 0x307   : > { %v1649_v39 = vadd.f32 %v1648_v43, %v1647_v33 }
 0x309   : > { %v1650_v46 = vmul.f32 0.00390625, %v1649_v39 }
 0x30b   : > { %1651 = vst.msk [vmem:[#allocation13] sm:$0x1] %vm1196_vm2, %v1650_v46 }
 0x30c PF: > { %p1774_p11 = scmp.eq.s32.totalorder %s2256_s13, 1  ;;  %s2221_s19 = smov [#allocation13]  }
 0x30d   : > { %s1658_s29 = sshll.u32 %s2221_s19, 4  ;;  %s1660_s24 = sshll.u32 %s3966_s2, 4  ;;  %s1659_s29 = int_to_ptr.vmem [resolvable:$true] %s1658_s29  ;;  %s1661_s24 = int_to_ptr.hbm [resolvable:$true] %s1660_s24 }
 0x30e   : > { %1763 = dma.vmem_to_hbm [thread:$0]  (%p1774_p11), %s1659_s29, 16, %s1661_s24, [#allocation10]  }
 0x30f   : > { %2196 = dma.done.wait (%p1774_p11), [#allocation10], 16  }
 0x310   : > { %2198 = vsyncadd (%p1774_p11), [#allocation10], 4294967280 }
 0x311 PF: > { %p16_p2 = scmp.ge.s32.totalorder %s2259_s14, 4   ;;  %s4651_s9 = smov %s2205_s10 }
 0x312   : > { %s4652_s10 = smov %s2209_s11  ;;  %s4653_s11 = smov %s2269_s17 }
 0x313   : > { %s4654_s12 = smov %s2259_s14  ;;  %18 = sbr.rel (!%p16_p2) target bundleno = 6 (0x6), region = 86 }
 0x318   :  { %1674 = vsyncpa [#allocation9], 1 }
 0x319   :  { %1676 = vsyncpa [#allocation9 + $0x1], 1 }
 0x31a   :  { %1677 = vsyncpa [#allocation12], 1 }
 0x31b   :  { %1679 = vsyncpa [#allocation12 + $0x1], 1 }
 0x31c   :  { %1680 = vsyncpa [#allocation10], 1 }
 0x31d   :  { %1682 = vsyncpa [#allocation10 + $0x1], 1 }

</bundles_post_ra>
